<compile_context>
chip_gen: v5e
topology: v5e:2x2
jax: 0.10.0
libtpu: 0.0.40
codegen_flags: <defaults>
</compile_context>

<pallas_src>
import functools
import math

import jax
import jax.numpy as jnp
from jax import lax
from jax.experimental import pallas as pl
from jax.experimental.pallas import tpu as pltpu


LANES = 128          # lane-dense channel padding
SELF_LOOP = 2.0      # GCNConv(improved=True) adds 2*I
NEG_INF = -1e30      # score mask for padded / inactive node slots


# ----------------------------------------------------------------------------
# Fused GraphUNet forward kernel (depth=3)
# ----------------------------------------------------------------------------
def _gunet_kernel(a_ref, x_ref,
                  wd0_ref, wd1_ref, wd2_ref, wd3_ref,
                  bd0_ref, bd1_ref, bd2_ref, bd3_ref,
                  wu0_ref, wu1_ref, wu2_ref,
                  bu0_ref, bu1_ref, bu2_ref,
                  p0_ref, p1_ref, p2_ref,
                  o_ref, *, n, ks, depth, final_act):
    f32 = jnp.float32

    io_r_i = lax.broadcasted_iota(jnp.int32, (n, n), 0)
    io_c_i = lax.broadcasted_iota(jnp.int32, (n, n), 1)
    io_r_f = io_r_i.astype(f32)
    io_c_f = io_c_i.astype(f32)
    eye_b = io_r_i == io_c_i
    eye_f = jnp.where(eye_b, 1.0, 0.0)
    row_i = lax.broadcasted_iota(jnp.int32, (n, 1), 0)     # node index, column vec
    col_i = lax.broadcasted_iota(jnp.int32, (1, n), 1)     # node index, row vec

    def dinv_of(adj):
        # improved self-loops guarantee deg >= SELF_LOOP > 0 -> rsqrt is safe.
        deg = jnp.sum(adj, axis=1, keepdims=True) + SELF_LOOP
        return lax.rsqrt(deg)

    def gcn(adj, dinv, h, w_ref, b_ref, act):
        # D^-1/2 (A + cI) D^-1/2 (h W) + b  ==  dinv*(A @ (dinv*hW) + c*(dinv*hW)) + b
        y = jnp.dot(h, w_ref[...], preferred_element_type=f32)
        z = dinv * y
        out = dinv * (jnp.dot(adj, z, preferred_element_type=f32)
                      + SELF_LOOP * z) + b_ref[...]
        if act == "relu":
            out = jnp.maximum(out, 0.0)
        elif act == "tanh":
            out = jnp.tanh(out)
        return out

    def augment(adj):
        # GraphUNet.augment_adj (dense): B = A + I ; A2 = B @ B ; zero the diag.
        b = jnp.where(eye_b, 1.0, adj)
        a2 = jnp.dot(b, b, preferred_element_type=f32)
        return jnp.where(eye_b, 0.0, a2)

    def perm_mats(score, n_act):
        # rank-based one-hot permutation (ties broken by lower index),
        # equivalent to perm = argsort(-score) on the active nodes.
        s_m = jnp.where(row_i < n_act, score, NEG_INF)             # (n,1)
        s_row = jnp.sum(eye_f * s_m, axis=0, keepdims=True)        # (1,n) == s_m^T
        before = jnp.logical_or(
            s_m > s_row,
            jnp.logical_and(s_m == s_row, io_r_i < io_c_i))        # j before c
        rank_row = jnp.sum(jnp.where(before, 1.0, 0.0),
                           axis=0, keepdims=True)                  # (1,n)
        rank_col = jnp.sum(eye_f * rank_row, axis=1, keepdims=True)  # (n,1)
        perm = jnp.where(io_r_f == rank_row, 1.0, 0.0)     # P[r,c]=1 iff rank(c)==r
        perm_t = jnp.where(io_c_f == rank_col, 1.0, 0.0)   # P^T
        return perm, perm_t

    w_down = (wd0_ref, wd1_ref, wd2_ref, wd3_ref)
    b_down = (bd0_ref, bd1_ref, bd2_ref, bd3_ref)
    w_up = (wu0_ref, wu1_ref, wu2_ref)
    b_up = (bu0_ref, bu1_ref, bu2_ref)
    p_pool = (p0_ref, p1_ref, p2_ref)

    adj = a_ref[...]
    x = x_ref[...]

    # ---- down conv 0 -------------------------------------------------------
    dinv = dinv_of(adj)
    x = gcn(adj, dinv, x, w_down[0], b_down[0], "relu")

    xs = [x]
    adjs = [adj]
    dinvs = [dinv]          # cached per-level normalization (reused on up path)
    unpools = []            # (P^T, k_lower) per pooling step
    n_act = n

    # ---- down path: augment -> TopK pool -> conv ---------------------------
    for i in range(1, depth + 1):
        k = ks[i - 1]
        adj = augment(adj)

        p = p_pool[i - 1][...]                                     # (1, LANES)
        p_inv_norm = lax.rsqrt(jnp.sum(p * p, axis=1, keepdims=True))
        score = jnp.tanh(jnp.sum(x * p, axis=1, keepdims=True) * p_inv_norm)

        perm, perm_t = perm_mats(score, n_act)
        keep_c = jnp.where(row_i < k, 1.0, 0.0)                    # (n,1)
        keep_r = jnp.where(col_i < k, 1.0, 0.0)                    # (1,n)

        x = jnp.dot(perm, x * score, preferred_element_type=f32) * keep_c
        adj = jnp.dot(jnp.dot(perm, adj, preferred_element_type=f32),
                      perm_t, preferred_element_type=f32) * keep_c * keep_r

        dinv = dinv_of(adj)
        x = gcn(adj, dinv, x, w_down[i], b_down[i], "relu")

        if i < depth:
            xs.append(x)
            adjs.append(adj)
            dinvs.append(dinv)
        unpools.append((perm_t, k))
        n_act = k

    # ---- up path: unpool (scatter) + residual -> conv -----------------------
    for i in range(depth):
        j = depth - 1 - i
        perm_t, k_low = unpools[j]
        keep_low = jnp.where(row_i < k_low, 1.0, 0.0)
        up = jnp.dot(perm_t, x * keep_low, preferred_element_type=f32)
        x = xs[j] + up                                             # sum_res=True
        act = "relu" if i < depth - 1 else final_act
        x = gcn(adjs[j], dinvs[j], x, w_up[i], b_up[i], act)

    o_ref[...] = x   # (n, 128) lane-dense, unmasked store


# ----------------------------------------------------------------------------
# Wrapper: static top-k sizes, lane padding, single pallas_call
# ----------------------------------------------------------------------------
def gunet_forward(x, A, params, pool_ratios, *, depth=3, final_act="tanh"):
    assert depth == 3, "kernel signature is specialized for depth=3"
    n = A.shape[0]
    out_ch = params["up_w"][-1].shape[1]

    # GraphUNet repeats the last ratio out to `depth`
    ratios = list(pool_ratios) + [pool_ratios[-1]] * (depth - len(pool_ratios))
    ks, m = [], n
    for r in ratios[:depth]:
        k = min(int(r), m) if r >= 1.0 else int(math.ceil(r * m))
        ks.append(k)
        m = k

    def pad2(a, rows, cols):
        return jnp.pad(a, ((0, rows - a.shape[0]), (0, cols - a.shape[1])))

    # lane-dense padding of all channel dims to 128 (zeros -> exact semantics)
    xp = pad2(x.astype(jnp.float32), n, LANES)
    wds = [pad2(w, LANES, LANES) for w in params["down_w"]]
    bds = [pad2(b.reshape(1, -1), 1, LANES) for b in params["down_b"]]
    wus = [pad2(w, LANES, LANES) for w in params["up_w"]]
    bus = [pad2(b.reshape(1, -1), 1, LANES) for b in params["up_b"]]
    pps = [pad2(p.reshape(1, -1), 1, LANES) for p in params["pool_w"]]

    inputs = [A.astype(jnp.float32), xp] + wds + bds + wus + bus + pps

    kern = functools.partial(_gunet_kernel, n=n, ks=tuple(ks), depth=depth,
                             final_act=final_act)
    out = pl.pallas_call(
        kern,
        grid=(1,),
        in_specs=[pl.BlockSpec(a.shape, lambda i: (0, 0)) for a in inputs],
        out_specs=pl.BlockSpec((n, LANES), lambda i: (0, 0)),
        out_shape=jax.ShapeDtypeStruct((n, LANES), jnp.float32),
        compiler_params=pltpu.CompilerParams(
            dimension_semantics=("arbitrary",)),
    )(*inputs)
    return out[:, :out_ch]   # strip channel padding


# ----------------------------------------------------------------------------
# Parameter init (matches PyG GCNConv glorot / TopKPooling uniform)
# ----------------------------------------------------------------------------
def glorot(key, shape):
    fan_in, fan_out = shape
    lim = math.sqrt(6.0 / (fan_in + fan_out))
    return jax.random.uniform(key, shape, jnp.float32, -lim, lim)


def init_params(key, in_ch, hid, out_ch, depth=3):
    keys = jax.random.split(key, 4 + depth + depth)
    params = {}
    down_dims = [(in_ch, hid)] + [(hid, hid)] * depth
    params["down_w"] = [glorot(keys[i], d) for i, d in enumerate(down_dims)]
    params["down_b"] = [jnp.zeros((d[1],), jnp.float32) for d in down_dims]
    up_dims = [(hid, hid)] * (depth - 1) + [(hid, out_ch)]
    params["up_w"] = [glorot(keys[4 + i], d) for i, d in enumerate(up_dims)]
    params["up_b"] = [jnp.zeros((d[1],), jnp.float32) for d in up_dims]
    params["pool_w"] = [
        jax.random.uniform(keys[4 + depth + i], (hid,), jnp.float32, -1.0, 1.0)
        for i in range(depth)
    ]
    return params


# ----------------------------------------------------------------------------
if __name__ == "__main__":
    N, IN_CH, HID, OUT_CH = 16, 4, 32, 4
    DEPTH = 3
    pool_ratios = [2000.0 / N, 0.5]        # GraphUNet extends last ratio to depth

    key = jax.random.PRNGKey(0)
    kx, ks_, kd, kp = jax.random.split(key, 4)

    # node features
    x = jax.random.normal(kx, (N, IN_CH), jnp.float32)

    # random undirected graph (edge_index equivalent) as dense symmetric adjacency
    src = jax.random.randint(ks_, (40,), 0, N)
    dst = jax.random.randint(kd, (40,), 0, N)
    A = jnp.zeros((N, N), jnp.float32)
    A = A.at[src, dst].set(1.0)
    A = A.at[dst, src].set(1.0)
    A = A * (1.0 - jnp.eye(N, dtype=jnp.float32))   # no self loops

    params = init_params(kp, IN_CH, HID, OUT_CH, depth=DEPTH)

    out = gunet_forward(x, A, params, pool_ratios, depth=DEPTH, final_act="tanh")
    out = jax.block_until_ready(out)
    assert out.shape == (N, OUT_CH) and out.dtype == jnp.float32
    assert bool(jnp.all(jnp.isfinite(out)))
    print("KERNEL_OK")
</pallas_src>

<mosaic_0001>
module attributes {stable_mosaic.version = 11 : i64} {
  func.func @_gunet_kernel(%arg0: i32, %arg1: memref<16x16xf32, #tpu.memory_space<vmem>>, %arg2: memref<16x128xf32, #tpu.memory_space<vmem>>, %arg3: memref<128x128xf32, #tpu.memory_space<vmem>>, %arg4: memref<128x128xf32, #tpu.memory_space<vmem>>, %arg5: memref<128x128xf32, #tpu.memory_space<vmem>>, %arg6: memref<128x128xf32, #tpu.memory_space<vmem>>, %arg7: memref<1x128xf32, #tpu.memory_space<vmem>>, %arg8: memref<1x128xf32, #tpu.memory_space<vmem>>, %arg9: memref<1x128xf32, #tpu.memory_space<vmem>>, %arg10: memref<1x128xf32, #tpu.memory_space<vmem>>, %arg11: memref<128x128xf32, #tpu.memory_space<vmem>>, %arg12: memref<128x128xf32, #tpu.memory_space<vmem>>, %arg13: memref<128x128xf32, #tpu.memory_space<vmem>>, %arg14: memref<1x128xf32, #tpu.memory_space<vmem>>, %arg15: memref<1x128xf32, #tpu.memory_space<vmem>>, %arg16: memref<1x128xf32, #tpu.memory_space<vmem>>, %arg17: memref<1x128xf32, #tpu.memory_space<vmem>>, %arg18: memref<1x128xf32, #tpu.memory_space<vmem>>, %arg19: memref<1x128xf32, #tpu.memory_space<vmem>>, %arg20: memref<16x128xf32, #tpu.memory_space<vmem>>) attributes {dimension_semantics = [#tpu.dimension_semantics<arbitrary>], iteration_bounds = array<i64: 1>, scalar_prefetch = 0 : i64, scratch_operands = 0 : i64, tpu.core_type = #tpu.core_type<tc>, window_params = [{pipeline_mode = #tpu.pipeline_mode<synchronous>, transform_indices = @transform_0, window_bounds = array<i64: 16, 16>}, {pipeline_mode = #tpu.pipeline_mode<synchronous>, transform_indices = @transform_1, window_bounds = array<i64: 16, 128>}, {pipeline_mode = #tpu.pipeline_mode<synchronous>, transform_indices = @transform_2, window_bounds = array<i64: 128, 128>}, {pipeline_mode = #tpu.pipeline_mode<synchronous>, transform_indices = @transform_3, window_bounds = array<i64: 128, 128>}, {pipeline_mode = #tpu.pipeline_mode<synchronous>, transform_indices = @transform_4, window_bounds = array<i64: 128, 128>}, {pipeline_mode = #tpu.pipeline_mode<synchronous>, transform_indices = @transform_5, window_bounds = array<i64: 128, 128>}, {pipeline_mode = #tpu.pipeline_mode<synchronous>, transform_indices = @transform_6, window_bounds = array<i64: 1, 128>}, {pipeline_mode = #tpu.pipeline_mode<synchronous>, transform_indices = @transform_7, window_bounds = array<i64: 1, 128>}, {pipeline_mode = #tpu.pipeline_mode<synchronous>, transform_indices = @transform_8, window_bounds = array<i64: 1, 128>}, {pipeline_mode = #tpu.pipeline_mode<synchronous>, transform_indices = @transform_9, window_bounds = array<i64: 1, 128>}, {pipeline_mode = #tpu.pipeline_mode<synchronous>, transform_indices = @transform_10, window_bounds = array<i64: 128, 128>}, {pipeline_mode = #tpu.pipeline_mode<synchronous>, transform_indices = @transform_11, window_bounds = array<i64: 128, 128>}, {pipeline_mode = #tpu.pipeline_mode<synchronous>, transform_indices = @transform_12, window_bounds = array<i64: 128, 128>}, {pipeline_mode = #tpu.pipeline_mode<synchronous>, transform_indices = @transform_13, window_bounds = array<i64: 1, 128>}, {pipeline_mode = #tpu.pipeline_mode<synchronous>, transform_indices = @transform_14, window_bounds = array<i64: 1, 128>}, {pipeline_mode = #tpu.pipeline_mode<synchronous>, transform_indices = @transform_15, window_bounds = array<i64: 1, 128>}, {pipeline_mode = #tpu.pipeline_mode<synchronous>, transform_indices = @transform_16, window_bounds = array<i64: 1, 128>}, {pipeline_mode = #tpu.pipeline_mode<synchronous>, transform_indices = @transform_17, window_bounds = array<i64: 1, 128>}, {pipeline_mode = #tpu.pipeline_mode<synchronous>, transform_indices = @transform_18, window_bounds = array<i64: 1, 128>}, {pipeline_mode = #tpu.pipeline_mode<synchronous>, transform_indices = @transform_19, window_bounds = array<i64: 16, 128>}]} {
    %0 = tpu.iota {dimensions = array<i32: 0>} : vector<16x16xi32>
    %1 = tpu.iota {dimensions = array<i32: 1>} : vector<16x16xi32>
    %2 = arith.sitofp %0 : vector<16x16xi32> to vector<16x16xf32>
    %3 = arith.sitofp %1 : vector<16x16xi32> to vector<16x16xf32>
    %4 = arith.cmpi eq, %0, %1 : vector<16x16xi32>
    %cst = arith.constant 1.000000e+00 : f32
    %cst_0 = arith.constant 0.000000e+00 : f32
    %5 = vector.broadcast %cst : f32 to vector<16x16xf32>
    %6 = vector.broadcast %cst_0 : f32 to vector<16x16xf32>
    %7 = arith.select %4, %5, %6 : vector<16x16xi1>, vector<16x16xf32>
    %8 = tpu.iota {dimensions = array<i32: 0>} : vector<16x1xi32>
    %9 = tpu.iota {dimensions = array<i32: 1>} : vector<1x16xi32>
    %c0 = arith.constant 0 : index
    %c0_1 = arith.constant 0 : index
    %10 = vector.load %arg1[%c0, %c0_1] : memref<16x16xf32, #tpu.memory_space<vmem>>, vector<16x16xf32>
    %c0_2 = arith.constant 0 : index
    %c0_3 = arith.constant 0 : index
    %11 = vector.load %arg2[%c0_2, %c0_3] : memref<16x128xf32, #tpu.memory_space<vmem>>, vector<16x128xf32>
    %cst_4 = arith.constant dense<0.000000e+00> : vector<16xf32>
    %12 = vector.multi_reduction <add>, %10, %cst_4 [1] : vector<16x16xf32> to vector<16xf32>
    %13 = vector.shape_cast %12 : vector<16xf32> to vector<16x1xf32>
    %cst_5 = arith.constant 2.000000e+00 : f32
    %14 = vector.broadcast %cst_5 : f32 to vector<16x1xf32>
    %15 = arith.addf %13, %14 : vector<16x1xf32>
    %16 = math.rsqrt %15 : vector<16x1xf32>
    %c0_6 = arith.constant 0 : index
    %c0_7 = arith.constant 0 : index
    %17 = vector.load %arg3[%c0_6, %c0_7] : memref<128x128xf32, #tpu.memory_space<vmem>>, vector<128x128xf32>
    %cst_8 = arith.constant dense<0.000000e+00> : vector<16x128xf32>
    %18 = tpu.matmul %11, %17, %cst_8 {dimension_numbers = #tpu.dot_dimension_numbers<[1], [0], [0], [1], [0, 0, 1, 1], [], []>} : vector<16x128xf32>, vector<128x128xf32>, vector<16x128xf32> -> vector<16x128xf32>
    %19 = vector.broadcast %16 : vector<16x1xf32> to vector<16x128xf32>
    %20 = arith.mulf %19, %18 : vector<16x128xf32>
    %cst_9 = arith.constant dense<0.000000e+00> : vector<16x128xf32>
    %21 = tpu.matmul %10, %20, %cst_9 {dimension_numbers = #tpu.dot_dimension_numbers<[1], [0], [0], [1], [0, 0, 1, 1], [], []>} : vector<16x16xf32>, vector<16x128xf32>, vector<16x128xf32> -> vector<16x128xf32>
    %cst_10 = arith.constant 2.000000e+00 : f32
    %22 = vector.broadcast %cst_10 : f32 to vector<16x128xf32>
    %23 = arith.mulf %22, %20 : vector<16x128xf32>
    %24 = arith.addf %21, %23 : vector<16x128xf32>
    %25 = vector.broadcast %16 : vector<16x1xf32> to vector<16x128xf32>
    %26 = arith.mulf %25, %24 : vector<16x128xf32>
    %c0_11 = arith.constant 0 : index
    %c0_12 = arith.constant 0 : index
    %27 = vector.load %arg7[%c0_11, %c0_12] : memref<1x128xf32, #tpu.memory_space<vmem>>, vector<1x128xf32>
    %28 = vector.broadcast %27 : vector<1x128xf32> to vector<16x128xf32>
    %29 = arith.addf %26, %28 : vector<16x128xf32>
    %cst_13 = arith.constant 0.000000e+00 : f32
    %30 = vector.broadcast %cst_13 : f32 to vector<16x128xf32>
    %31 = arith.maximumf %29, %30 : vector<16x128xf32>
    %cst_14 = arith.constant 1.000000e+00 : f32
    %32 = vector.broadcast %cst_14 : f32 to vector<16x16xf32>
    %33 = arith.select %4, %32, %10 : vector<16x16xi1>, vector<16x16xf32>
    %cst_15 = arith.constant dense<0.000000e+00> : vector<16x16xf32>
    %34 = tpu.matmul %33, %33, %cst_15 {dimension_numbers = #tpu.dot_dimension_numbers<[1], [0], [0], [1], [0, 0, 1, 1], [], []>} : vector<16x16xf32>, vector<16x16xf32>, vector<16x16xf32> -> vector<16x16xf32>
    %cst_16 = arith.constant 0.000000e+00 : f32
    %35 = vector.broadcast %cst_16 : f32 to vector<16x16xf32>
    %36 = arith.select %4, %35, %34 : vector<16x16xi1>, vector<16x16xf32>
    %c0_17 = arith.constant 0 : index
    %c0_18 = arith.constant 0 : index
    %37 = vector.load %arg17[%c0_17, %c0_18] : memref<1x128xf32, #tpu.memory_space<vmem>>, vector<1x128xf32>
    %38 = arith.mulf %37, %37 : vector<1x128xf32>
    %cst_19 = arith.constant dense<0.000000e+00> : vector<1xf32>
    %39 = vector.multi_reduction <add>, %38, %cst_19 [1] : vector<1x128xf32> to vector<1xf32>
    %40 = vector.shape_cast %39 : vector<1xf32> to vector<1x1xf32>
    %41 = math.rsqrt %40 : vector<1x1xf32>
    %42 = vector.broadcast %37 : vector<1x128xf32> to vector<16x128xf32>
    %43 = arith.mulf %31, %42 : vector<16x128xf32>
    %cst_20 = arith.constant dense<0.000000e+00> : vector<16xf32>
    %44 = vector.multi_reduction <add>, %43, %cst_20 [1] : vector<16x128xf32> to vector<16xf32>
    %45 = vector.shape_cast %44 : vector<16xf32> to vector<16x1xf32>
    %46 = vector.broadcast %41 : vector<1x1xf32> to vector<16x1xf32>
    %47 = arith.mulf %45, %46 : vector<16x1xf32>
    %48 = math.tanh %47 : vector<16x1xf32>
    %c16_i32 = arith.constant 16 : i32
    %49 = vector.broadcast %c16_i32 : i32 to vector<16x1xi32>
    %50 = arith.cmpi slt, %8, %49 : vector<16x1xi32>
    %cst_21 = arith.constant -1.000000e+30 : f32
    %51 = vector.broadcast %cst_21 : f32 to vector<16x1xf32>
    %52 = arith.select %50, %48, %51 : vector<16x1xi1>, vector<16x1xf32>
    %53 = vector.broadcast %52 : vector<16x1xf32> to vector<16x16xf32>
    %54 = arith.mulf %7, %53 : vector<16x16xf32>
    %cst_22 = arith.constant dense<0.000000e+00> : vector<16xf32>
    %55 = vector.multi_reduction <add>, %54, %cst_22 [0] : vector<16x16xf32> to vector<16xf32>
    %56 = vector.shape_cast %55 : vector<16xf32> to vector<1x16xf32>
    %57 = vector.broadcast %52 : vector<16x1xf32> to vector<16x16xf32>
    %58 = vector.broadcast %56 : vector<1x16xf32> to vector<16x16xf32>
    %59 = arith.cmpf ogt, %57, %58 : vector<16x16xf32>
    %60 = vector.broadcast %52 : vector<16x1xf32> to vector<16x16xf32>
    %61 = vector.broadcast %56 : vector<1x16xf32> to vector<16x16xf32>
    %62 = arith.cmpf oeq, %60, %61 : vector<16x16xf32>
    %63 = arith.cmpi slt, %0, %1 : vector<16x16xi32>
    %64 = arith.andi %62, %63 : vector<16x16xi1>
    %65 = arith.ori %59, %64 : vector<16x16xi1>
    %cst_23 = arith.constant 1.000000e+00 : f32
    %cst_24 = arith.constant 0.000000e+00 : f32
    %66 = vector.broadcast %cst_23 : f32 to vector<16x16xf32>
    %67 = vector.broadcast %cst_24 : f32 to vector<16x16xf32>
    %68 = arith.select %65, %66, %67 : vector<16x16xi1>, vector<16x16xf32>
    %cst_25 = arith.constant dense<0.000000e+00> : vector<16xf32>
    %69 = vector.multi_reduction <add>, %68, %cst_25 [0] : vector<16x16xf32> to vector<16xf32>
    %70 = vector.shape_cast %69 : vector<16xf32> to vector<1x16xf32>
    %71 = vector.broadcast %70 : vector<1x16xf32> to vector<16x16xf32>
    %72 = arith.mulf %7, %71 : vector<16x16xf32>
    %cst_26 = arith.constant dense<0.000000e+00> : vector<16xf32>
    %73 = vector.multi_reduction <add>, %72, %cst_26 [1] : vector<16x16xf32> to vector<16xf32>
    %74 = vector.shape_cast %73 : vector<16xf32> to vector<16x1xf32>
    %75 = vector.broadcast %70 : vector<1x16xf32> to vector<16x16xf32>
    %76 = arith.cmpf oeq, %2, %75 : vector<16x16xf32>
    %cst_27 = arith.constant 1.000000e+00 : f32
    %cst_28 = arith.constant 0.000000e+00 : f32
    %77 = vector.broadcast %cst_27 : f32 to vector<16x16xf32>
    %78 = vector.broadcast %cst_28 : f32 to vector<16x16xf32>
    %79 = arith.select %76, %77, %78 : vector<16x16xi1>, vector<16x16xf32>
    %80 = vector.broadcast %74 : vector<16x1xf32> to vector<16x16xf32>
    %81 = arith.cmpf oeq, %3, %80 : vector<16x16xf32>
    %cst_29 = arith.constant 1.000000e+00 : f32
    %cst_30 = arith.constant 0.000000e+00 : f32
    %82 = vector.broadcast %cst_29 : f32 to vector<16x16xf32>
    %83 = vector.broadcast %cst_30 : f32 to vector<16x16xf32>
    %84 = arith.select %81, %82, %83 : vector<16x16xi1>, vector<16x16xf32>
    %c16_i32_31 = arith.constant 16 : i32
    %85 = vector.broadcast %c16_i32_31 : i32 to vector<16x1xi32>
    %86 = arith.cmpi slt, %8, %85 : vector<16x1xi32>
    %cst_32 = arith.constant 1.000000e+00 : f32
    %cst_33 = arith.constant 0.000000e+00 : f32
    %87 = vector.broadcast %cst_32 : f32 to vector<16x1xf32>
    %88 = vector.broadcast %cst_33 : f32 to vector<16x1xf32>
    %89 = arith.select %86, %87, %88 : vector<16x1xi1>, vector<16x1xf32>
    %c16_i32_34 = arith.constant 16 : i32
    %90 = vector.broadcast %c16_i32_34 : i32 to vector<1x16xi32>
    %91 = arith.cmpi slt, %9, %90 : vector<1x16xi32>
    %cst_35 = arith.constant 1.000000e+00 : f32
    %cst_36 = arith.constant 0.000000e+00 : f32
    %92 = vector.broadcast %cst_35 : f32 to vector<1x16xf32>
    %93 = vector.broadcast %cst_36 : f32 to vector<1x16xf32>
    %94 = arith.select %91, %92, %93 : vector<1x16xi1>, vector<1x16xf32>
    %95 = vector.broadcast %48 : vector<16x1xf32> to vector<16x128xf32>
    %96 = arith.mulf %31, %95 : vector<16x128xf32>
    %cst_37 = arith.constant dense<0.000000e+00> : vector<16x128xf32>
    %97 = tpu.matmul %79, %96, %cst_37 {dimension_numbers = #tpu.dot_dimension_numbers<[1], [0], [0], [1], [0, 0, 1, 1], [], []>} : vector<16x16xf32>, vector<16x128xf32>, vector<16x128xf32> -> vector<16x128xf32>
    %98 = vector.broadcast %89 : vector<16x1xf32> to vector<16x128xf32>
    %99 = arith.mulf %97, %98 : vector<16x128xf32>
    %cst_38 = arith.constant dense<0.000000e+00> : vector<16x16xf32>
    %100 = tpu.matmul %79, %36, %cst_38 {dimension_numbers = #tpu.dot_dimension_numbers<[1], [0], [0], [1], [0, 0, 1, 1], [], []>} : vector<16x16xf32>, vector<16x16xf32>, vector<16x16xf32> -> vector<16x16xf32>
    %cst_39 = arith.constant dense<0.000000e+00> : vector<16x16xf32>
    %101 = tpu.matmul %100, %84, %cst_39 {dimension_numbers = #tpu.dot_dimension_numbers<[1], [0], [0], [1], [0, 0, 1, 1], [], []>} : vector<16x16xf32>, vector<16x16xf32>, vector<16x16xf32> -> vector<16x16xf32>
    %102 = vector.broadcast %89 : vector<16x1xf32> to vector<16x16xf32>
    %103 = arith.mulf %101, %102 : vector<16x16xf32>
    %104 = vector.broadcast %94 : vector<1x16xf32> to vector<16x16xf32>
    %105 = arith.mulf %103, %104 : vector<16x16xf32>
    %cst_40 = arith.constant dense<0.000000e+00> : vector<16xf32>
    %106 = vector.multi_reduction <add>, %105, %cst_40 [1] : vector<16x16xf32> to vector<16xf32>
    %107 = vector.shape_cast %106 : vector<16xf32> to vector<16x1xf32>
    %cst_41 = arith.constant 2.000000e+00 : f32
    %108 = vector.broadcast %cst_41 : f32 to vector<16x1xf32>
    %109 = arith.addf %107, %108 : vector<16x1xf32>
    %110 = math.rsqrt %109 : vector<16x1xf32>
    %c0_42 = arith.constant 0 : index
    %c0_43 = arith.constant 0 : index
    %111 = vector.load %arg4[%c0_42, %c0_43] : memref<128x128xf32, #tpu.memory_space<vmem>>, vector<128x128xf32>
    %cst_44 = arith.constant dense<0.000000e+00> : vector<16x128xf32>
    %112 = tpu.matmul %99, %111, %cst_44 {dimension_numbers = #tpu.dot_dimension_numbers<[1], [0], [0], [1], [0, 0, 1, 1], [], []>} : vector<16x128xf32>, vector<128x128xf32>, vector<16x128xf32> -> vector<16x128xf32>
    %113 = vector.broadcast %110 : vector<16x1xf32> to vector<16x128xf32>
    %114 = arith.mulf %113, %112 : vector<16x128xf32>
    %cst_45 = arith.constant dense<0.000000e+00> : vector<16x128xf32>
    %115 = tpu.matmul %105, %114, %cst_45 {dimension_numbers = #tpu.dot_dimension_numbers<[1], [0], [0], [1], [0, 0, 1, 1], [], []>} : vector<16x16xf32>, vector<16x128xf32>, vector<16x128xf32> -> vector<16x128xf32>
    %cst_46 = arith.constant 2.000000e+00 : f32
    %116 = vector.broadcast %cst_46 : f32 to vector<16x128xf32>
    %117 = arith.mulf %116, %114 : vector<16x128xf32>
    %118 = arith.addf %115, %117 : vector<16x128xf32>
    %119 = vector.broadcast %110 : vector<16x1xf32> to vector<16x128xf32>
    %120 = arith.mulf %119, %118 : vector<16x128xf32>
    %c0_47 = arith.constant 0 : index
    %c0_48 = arith.constant 0 : index
    %121 = vector.load %arg8[%c0_47, %c0_48] : memref<1x128xf32, #tpu.memory_space<vmem>>, vector<1x128xf32>
    %122 = vector.broadcast %121 : vector<1x128xf32> to vector<16x128xf32>
    %123 = arith.addf %120, %122 : vector<16x128xf32>
    %cst_49 = arith.constant 0.000000e+00 : f32
    %124 = vector.broadcast %cst_49 : f32 to vector<16x128xf32>
    %125 = arith.maximumf %123, %124 : vector<16x128xf32>
    %cst_50 = arith.constant 1.000000e+00 : f32
    %126 = vector.broadcast %cst_50 : f32 to vector<16x16xf32>
    %127 = arith.select %4, %126, %105 : vector<16x16xi1>, vector<16x16xf32>
    %cst_51 = arith.constant dense<0.000000e+00> : vector<16x16xf32>
    %128 = tpu.matmul %127, %127, %cst_51 {dimension_numbers = #tpu.dot_dimension_numbers<[1], [0], [0], [1], [0, 0, 1, 1], [], []>} : vector<16x16xf32>, vector<16x16xf32>, vector<16x16xf32> -> vector<16x16xf32>
    %cst_52 = arith.constant 0.000000e+00 : f32
    %129 = vector.broadcast %cst_52 : f32 to vector<16x16xf32>
    %130 = arith.select %4, %129, %128 : vector<16x16xi1>, vector<16x16xf32>
    %c0_53 = arith.constant 0 : index
    %c0_54 = arith.constant 0 : index
    %131 = vector.load %arg18[%c0_53, %c0_54] : memref<1x128xf32, #tpu.memory_space<vmem>>, vector<1x128xf32>
    %132 = arith.mulf %131, %131 : vector<1x128xf32>
    %cst_55 = arith.constant dense<0.000000e+00> : vector<1xf32>
    %133 = vector.multi_reduction <add>, %132, %cst_55 [1] : vector<1x128xf32> to vector<1xf32>
    %134 = vector.shape_cast %133 : vector<1xf32> to vector<1x1xf32>
    %135 = math.rsqrt %134 : vector<1x1xf32>
    %136 = vector.broadcast %131 : vector<1x128xf32> to vector<16x128xf32>
    %137 = arith.mulf %125, %136 : vector<16x128xf32>
    %cst_56 = arith.constant dense<0.000000e+00> : vector<16xf32>
    %138 = vector.multi_reduction <add>, %137, %cst_56 [1] : vector<16x128xf32> to vector<16xf32>
    %139 = vector.shape_cast %138 : vector<16xf32> to vector<16x1xf32>
    %140 = vector.broadcast %135 : vector<1x1xf32> to vector<16x1xf32>
    %141 = arith.mulf %139, %140 : vector<16x1xf32>
    %142 = math.tanh %141 : vector<16x1xf32>
    %c16_i32_57 = arith.constant 16 : i32
    %143 = vector.broadcast %c16_i32_57 : i32 to vector<16x1xi32>
    %144 = arith.cmpi slt, %8, %143 : vector<16x1xi32>
    %cst_58 = arith.constant -1.000000e+30 : f32
    %145 = vector.broadcast %cst_58 : f32 to vector<16x1xf32>
    %146 = arith.select %144, %142, %145 : vector<16x1xi1>, vector<16x1xf32>
    %147 = vector.broadcast %146 : vector<16x1xf32> to vector<16x16xf32>
    %148 = arith.mulf %7, %147 : vector<16x16xf32>
    %cst_59 = arith.constant dense<0.000000e+00> : vector<16xf32>
    %149 = vector.multi_reduction <add>, %148, %cst_59 [0] : vector<16x16xf32> to vector<16xf32>
    %150 = vector.shape_cast %149 : vector<16xf32> to vector<1x16xf32>
    %151 = vector.broadcast %146 : vector<16x1xf32> to vector<16x16xf32>
    %152 = vector.broadcast %150 : vector<1x16xf32> to vector<16x16xf32>
    %153 = arith.cmpf ogt, %151, %152 : vector<16x16xf32>
    %154 = vector.broadcast %146 : vector<16x1xf32> to vector<16x16xf32>
    %155 = vector.broadcast %150 : vector<1x16xf32> to vector<16x16xf32>
    %156 = arith.cmpf oeq, %154, %155 : vector<16x16xf32>
    %157 = arith.cmpi slt, %0, %1 : vector<16x16xi32>
    %158 = arith.andi %156, %157 : vector<16x16xi1>
    %159 = arith.ori %153, %158 : vector<16x16xi1>
    %cst_60 = arith.constant 1.000000e+00 : f32
    %cst_61 = arith.constant 0.000000e+00 : f32
    %160 = vector.broadcast %cst_60 : f32 to vector<16x16xf32>
    %161 = vector.broadcast %cst_61 : f32 to vector<16x16xf32>
    %162 = arith.select %159, %160, %161 : vector<16x16xi1>, vector<16x16xf32>
    %cst_62 = arith.constant dense<0.000000e+00> : vector<16xf32>
    %163 = vector.multi_reduction <add>, %162, %cst_62 [0] : vector<16x16xf32> to vector<16xf32>
    %164 = vector.shape_cast %163 : vector<16xf32> to vector<1x16xf32>
    %165 = vector.broadcast %164 : vector<1x16xf32> to vector<16x16xf32>
    %166 = arith.mulf %7, %165 : vector<16x16xf32>
    %cst_63 = arith.constant dense<0.000000e+00> : vector<16xf32>
    %167 = vector.multi_reduction <add>, %166, %cst_63 [1] : vector<16x16xf32> to vector<16xf32>
    %168 = vector.shape_cast %167 : vector<16xf32> to vector<16x1xf32>
    %169 = vector.broadcast %164 : vector<1x16xf32> to vector<16x16xf32>
    %170 = arith.cmpf oeq, %2, %169 : vector<16x16xf32>
    %cst_64 = arith.constant 1.000000e+00 : f32
    %cst_65 = arith.constant 0.000000e+00 : f32
    %171 = vector.broadcast %cst_64 : f32 to vector<16x16xf32>
    %172 = vector.broadcast %cst_65 : f32 to vector<16x16xf32>
    %173 = arith.select %170, %171, %172 : vector<16x16xi1>, vector<16x16xf32>
    %174 = vector.broadcast %168 : vector<16x1xf32> to vector<16x16xf32>
    %175 = arith.cmpf oeq, %3, %174 : vector<16x16xf32>
    %cst_66 = arith.constant 1.000000e+00 : f32
    %cst_67 = arith.constant 0.000000e+00 : f32
    %176 = vector.broadcast %cst_66 : f32 to vector<16x16xf32>
    %177 = vector.broadcast %cst_67 : f32 to vector<16x16xf32>
    %178 = arith.select %175, %176, %177 : vector<16x16xi1>, vector<16x16xf32>
    %c8_i32 = arith.constant 8 : i32
    %179 = vector.broadcast %c8_i32 : i32 to vector<16x1xi32>
    %180 = arith.cmpi slt, %8, %179 : vector<16x1xi32>
    %cst_68 = arith.constant 1.000000e+00 : f32
    %cst_69 = arith.constant 0.000000e+00 : f32
    %181 = vector.broadcast %cst_68 : f32 to vector<16x1xf32>
    %182 = vector.broadcast %cst_69 : f32 to vector<16x1xf32>
    %183 = arith.select %180, %181, %182 : vector<16x1xi1>, vector<16x1xf32>
    %c8_i32_70 = arith.constant 8 : i32
    %184 = vector.broadcast %c8_i32_70 : i32 to vector<1x16xi32>
    %185 = arith.cmpi slt, %9, %184 : vector<1x16xi32>
    %cst_71 = arith.constant 1.000000e+00 : f32
    %cst_72 = arith.constant 0.000000e+00 : f32
    %186 = vector.broadcast %cst_71 : f32 to vector<1x16xf32>
    %187 = vector.broadcast %cst_72 : f32 to vector<1x16xf32>
    %188 = arith.select %185, %186, %187 : vector<1x16xi1>, vector<1x16xf32>
    %189 = vector.broadcast %142 : vector<16x1xf32> to vector<16x128xf32>
    %190 = arith.mulf %125, %189 : vector<16x128xf32>
    %cst_73 = arith.constant dense<0.000000e+00> : vector<16x128xf32>
    %191 = tpu.matmul %173, %190, %cst_73 {dimension_numbers = #tpu.dot_dimension_numbers<[1], [0], [0], [1], [0, 0, 1, 1], [], []>} : vector<16x16xf32>, vector<16x128xf32>, vector<16x128xf32> -> vector<16x128xf32>
    %192 = vector.broadcast %183 : vector<16x1xf32> to vector<16x128xf32>
    %193 = arith.mulf %191, %192 : vector<16x128xf32>
    %cst_74 = arith.constant dense<0.000000e+00> : vector<16x16xf32>
    %194 = tpu.matmul %173, %130, %cst_74 {dimension_numbers = #tpu.dot_dimension_numbers<[1], [0], [0], [1], [0, 0, 1, 1], [], []>} : vector<16x16xf32>, vector<16x16xf32>, vector<16x16xf32> -> vector<16x16xf32>
    %cst_75 = arith.constant dense<0.000000e+00> : vector<16x16xf32>
    %195 = tpu.matmul %194, %178, %cst_75 {dimension_numbers = #tpu.dot_dimension_numbers<[1], [0], [0], [1], [0, 0, 1, 1], [], []>} : vector<16x16xf32>, vector<16x16xf32>, vector<16x16xf32> -> vector<16x16xf32>
    %196 = vector.broadcast %183 : vector<16x1xf32> to vector<16x16xf32>
    %197 = arith.mulf %195, %196 : vector<16x16xf32>
    %198 = vector.broadcast %188 : vector<1x16xf32> to vector<16x16xf32>
    %199 = arith.mulf %197, %198 : vector<16x16xf32>
    %cst_76 = arith.constant dense<0.000000e+00> : vector<16xf32>
    %200 = vector.multi_reduction <add>, %199, %cst_76 [1] : vector<16x16xf32> to vector<16xf32>
    %201 = vector.shape_cast %200 : vector<16xf32> to vector<16x1xf32>
    %cst_77 = arith.constant 2.000000e+00 : f32
    %202 = vector.broadcast %cst_77 : f32 to vector<16x1xf32>
    %203 = arith.addf %201, %202 : vector<16x1xf32>
    %204 = math.rsqrt %203 : vector<16x1xf32>
    %c0_78 = arith.constant 0 : index
    %c0_79 = arith.constant 0 : index
    %205 = vector.load %arg5[%c0_78, %c0_79] : memref<128x128xf32, #tpu.memory_space<vmem>>, vector<128x128xf32>
    %cst_80 = arith.constant dense<0.000000e+00> : vector<16x128xf32>
    %206 = tpu.matmul %193, %205, %cst_80 {dimension_numbers = #tpu.dot_dimension_numbers<[1], [0], [0], [1], [0, 0, 1, 1], [], []>} : vector<16x128xf32>, vector<128x128xf32>, vector<16x128xf32> -> vector<16x128xf32>
    %207 = vector.broadcast %204 : vector<16x1xf32> to vector<16x128xf32>
    %208 = arith.mulf %207, %206 : vector<16x128xf32>
    %cst_81 = arith.constant dense<0.000000e+00> : vector<16x128xf32>
    %209 = tpu.matmul %199, %208, %cst_81 {dimension_numbers = #tpu.dot_dimension_numbers<[1], [0], [0], [1], [0, 0, 1, 1], [], []>} : vector<16x16xf32>, vector<16x128xf32>, vector<16x128xf32> -> vector<16x128xf32>
    %cst_82 = arith.constant 2.000000e+00 : f32
    %210 = vector.broadcast %cst_82 : f32 to vector<16x128xf32>
    %211 = arith.mulf %210, %208 : vector<16x128xf32>
    %212 = arith.addf %209, %211 : vector<16x128xf32>
    %213 = vector.broadcast %204 : vector<16x1xf32> to vector<16x128xf32>
    %214 = arith.mulf %213, %212 : vector<16x128xf32>
    %c0_83 = arith.constant 0 : index
    %c0_84 = arith.constant 0 : index
    %215 = vector.load %arg9[%c0_83, %c0_84] : memref<1x128xf32, #tpu.memory_space<vmem>>, vector<1x128xf32>
    %216 = vector.broadcast %215 : vector<1x128xf32> to vector<16x128xf32>
    %217 = arith.addf %214, %216 : vector<16x128xf32>
    %cst_85 = arith.constant 0.000000e+00 : f32
    %218 = vector.broadcast %cst_85 : f32 to vector<16x128xf32>
    %219 = arith.maximumf %217, %218 : vector<16x128xf32>
    %cst_86 = arith.constant 1.000000e+00 : f32
    %220 = vector.broadcast %cst_86 : f32 to vector<16x16xf32>
    %221 = arith.select %4, %220, %199 : vector<16x16xi1>, vector<16x16xf32>
    %cst_87 = arith.constant dense<0.000000e+00> : vector<16x16xf32>
    %222 = tpu.matmul %221, %221, %cst_87 {dimension_numbers = #tpu.dot_dimension_numbers<[1], [0], [0], [1], [0, 0, 1, 1], [], []>} : vector<16x16xf32>, vector<16x16xf32>, vector<16x16xf32> -> vector<16x16xf32>
    %cst_88 = arith.constant 0.000000e+00 : f32
    %223 = vector.broadcast %cst_88 : f32 to vector<16x16xf32>
    %224 = arith.select %4, %223, %222 : vector<16x16xi1>, vector<16x16xf32>
    %c0_89 = arith.constant 0 : index
    %c0_90 = arith.constant 0 : index
    %225 = vector.load %arg19[%c0_89, %c0_90] : memref<1x128xf32, #tpu.memory_space<vmem>>, vector<1x128xf32>
    %226 = arith.mulf %225, %225 : vector<1x128xf32>
    %cst_91 = arith.constant dense<0.000000e+00> : vector<1xf32>
    %227 = vector.multi_reduction <add>, %226, %cst_91 [1] : vector<1x128xf32> to vector<1xf32>
    %228 = vector.shape_cast %227 : vector<1xf32> to vector<1x1xf32>
    %229 = math.rsqrt %228 : vector<1x1xf32>
    %230 = vector.broadcast %225 : vector<1x128xf32> to vector<16x128xf32>
    %231 = arith.mulf %219, %230 : vector<16x128xf32>
    %cst_92 = arith.constant dense<0.000000e+00> : vector<16xf32>
    %232 = vector.multi_reduction <add>, %231, %cst_92 [1] : vector<16x128xf32> to vector<16xf32>
    %233 = vector.shape_cast %232 : vector<16xf32> to vector<16x1xf32>
    %234 = vector.broadcast %229 : vector<1x1xf32> to vector<16x1xf32>
    %235 = arith.mulf %233, %234 : vector<16x1xf32>
    %236 = math.tanh %235 : vector<16x1xf32>
    %c8_i32_93 = arith.constant 8 : i32
    %237 = vector.broadcast %c8_i32_93 : i32 to vector<16x1xi32>
    %238 = arith.cmpi slt, %8, %237 : vector<16x1xi32>
    %cst_94 = arith.constant -1.000000e+30 : f32
    %239 = vector.broadcast %cst_94 : f32 to vector<16x1xf32>
    %240 = arith.select %238, %236, %239 : vector<16x1xi1>, vector<16x1xf32>
    %241 = vector.broadcast %240 : vector<16x1xf32> to vector<16x16xf32>
    %242 = arith.mulf %7, %241 : vector<16x16xf32>
    %cst_95 = arith.constant dense<0.000000e+00> : vector<16xf32>
    %243 = vector.multi_reduction <add>, %242, %cst_95 [0] : vector<16x16xf32> to vector<16xf32>
    %244 = vector.shape_cast %243 : vector<16xf32> to vector<1x16xf32>
    %245 = vector.broadcast %240 : vector<16x1xf32> to vector<16x16xf32>
    %246 = vector.broadcast %244 : vector<1x16xf32> to vector<16x16xf32>
    %247 = arith.cmpf ogt, %245, %246 : vector<16x16xf32>
    %248 = vector.broadcast %240 : vector<16x1xf32> to vector<16x16xf32>
    %249 = vector.broadcast %244 : vector<1x16xf32> to vector<16x16xf32>
    %250 = arith.cmpf oeq, %248, %249 : vector<16x16xf32>
    %251 = arith.cmpi slt, %0, %1 : vector<16x16xi32>
    %252 = arith.andi %250, %251 : vector<16x16xi1>
    %253 = arith.ori %247, %252 : vector<16x16xi1>
    %cst_96 = arith.constant 1.000000e+00 : f32
    %cst_97 = arith.constant 0.000000e+00 : f32
    %254 = vector.broadcast %cst_96 : f32 to vector<16x16xf32>
    %255 = vector.broadcast %cst_97 : f32 to vector<16x16xf32>
    %256 = arith.select %253, %254, %255 : vector<16x16xi1>, vector<16x16xf32>
    %cst_98 = arith.constant dense<0.000000e+00> : vector<16xf32>
    %257 = vector.multi_reduction <add>, %256, %cst_98 [0] : vector<16x16xf32> to vector<16xf32>
    %258 = vector.shape_cast %257 : vector<16xf32> to vector<1x16xf32>
    %259 = vector.broadcast %258 : vector<1x16xf32> to vector<16x16xf32>
    %260 = arith.mulf %7, %259 : vector<16x16xf32>
    %cst_99 = arith.constant dense<0.000000e+00> : vector<16xf32>
    %261 = vector.multi_reduction <add>, %260, %cst_99 [1] : vector<16x16xf32> to vector<16xf32>
    %262 = vector.shape_cast %261 : vector<16xf32> to vector<16x1xf32>
    %263 = vector.broadcast %258 : vector<1x16xf32> to vector<16x16xf32>
    %264 = arith.cmpf oeq, %2, %263 : vector<16x16xf32>
    %cst_100 = arith.constant 1.000000e+00 : f32
    %cst_101 = arith.constant 0.000000e+00 : f32
    %265 = vector.broadcast %cst_100 : f32 to vector<16x16xf32>
    %266 = vector.broadcast %cst_101 : f32 to vector<16x16xf32>
    %267 = arith.select %264, %265, %266 : vector<16x16xi1>, vector<16x16xf32>
    %268 = vector.broadcast %262 : vector<16x1xf32> to vector<16x16xf32>
    %269 = arith.cmpf oeq, %3, %268 : vector<16x16xf32>
    %cst_102 = arith.constant 1.000000e+00 : f32
    %cst_103 = arith.constant 0.000000e+00 : f32
    %270 = vector.broadcast %cst_102 : f32 to vector<16x16xf32>
    %271 = vector.broadcast %cst_103 : f32 to vector<16x16xf32>
    %272 = arith.select %269, %270, %271 : vector<16x16xi1>, vector<16x16xf32>
    %c4_i32 = arith.constant 4 : i32
    %273 = vector.broadcast %c4_i32 : i32 to vector<16x1xi32>
    %274 = arith.cmpi slt, %8, %273 : vector<16x1xi32>
    %cst_104 = arith.constant 1.000000e+00 : f32
    %cst_105 = arith.constant 0.000000e+00 : f32
    %275 = vector.broadcast %cst_104 : f32 to vector<16x1xf32>
    %276 = vector.broadcast %cst_105 : f32 to vector<16x1xf32>
    %277 = arith.select %274, %275, %276 : vector<16x1xi1>, vector<16x1xf32>
    %c4_i32_106 = arith.constant 4 : i32
    %278 = vector.broadcast %c4_i32_106 : i32 to vector<1x16xi32>
    %279 = arith.cmpi slt, %9, %278 : vector<1x16xi32>
    %cst_107 = arith.constant 1.000000e+00 : f32
    %cst_108 = arith.constant 0.000000e+00 : f32
    %280 = vector.broadcast %cst_107 : f32 to vector<1x16xf32>
    %281 = vector.broadcast %cst_108 : f32 to vector<1x16xf32>
    %282 = arith.select %279, %280, %281 : vector<1x16xi1>, vector<1x16xf32>
    %283 = vector.broadcast %236 : vector<16x1xf32> to vector<16x128xf32>
    %284 = arith.mulf %219, %283 : vector<16x128xf32>
    %cst_109 = arith.constant dense<0.000000e+00> : vector<16x128xf32>
    %285 = tpu.matmul %267, %284, %cst_109 {dimension_numbers = #tpu.dot_dimension_numbers<[1], [0], [0], [1], [0, 0, 1, 1], [], []>} : vector<16x16xf32>, vector<16x128xf32>, vector<16x128xf32> -> vector<16x128xf32>
    %286 = vector.broadcast %277 : vector<16x1xf32> to vector<16x128xf32>
    %287 = arith.mulf %285, %286 : vector<16x128xf32>
    %cst_110 = arith.constant dense<0.000000e+00> : vector<16x16xf32>
    %288 = tpu.matmul %267, %224, %cst_110 {dimension_numbers = #tpu.dot_dimension_numbers<[1], [0], [0], [1], [0, 0, 1, 1], [], []>} : vector<16x16xf32>, vector<16x16xf32>, vector<16x16xf32> -> vector<16x16xf32>
    %cst_111 = arith.constant dense<0.000000e+00> : vector<16x16xf32>
    %289 = tpu.matmul %288, %272, %cst_111 {dimension_numbers = #tpu.dot_dimension_numbers<[1], [0], [0], [1], [0, 0, 1, 1], [], []>} : vector<16x16xf32>, vector<16x16xf32>, vector<16x16xf32> -> vector<16x16xf32>
    %290 = vector.broadcast %277 : vector<16x1xf32> to vector<16x16xf32>
    %291 = arith.mulf %289, %290 : vector<16x16xf32>
    %292 = vector.broadcast %282 : vector<1x16xf32> to vector<16x16xf32>
    %293 = arith.mulf %291, %292 : vector<16x16xf32>
    %cst_112 = arith.constant dense<0.000000e+00> : vector<16xf32>
    %294 = vector.multi_reduction <add>, %293, %cst_112 [1] : vector<16x16xf32> to vector<16xf32>
    %295 = vector.shape_cast %294 : vector<16xf32> to vector<16x1xf32>
    %cst_113 = arith.constant 2.000000e+00 : f32
    %296 = vector.broadcast %cst_113 : f32 to vector<16x1xf32>
    %297 = arith.addf %295, %296 : vector<16x1xf32>
    %298 = math.rsqrt %297 : vector<16x1xf32>
    %c0_114 = arith.constant 0 : index
    %c0_115 = arith.constant 0 : index
    %299 = vector.load %arg6[%c0_114, %c0_115] : memref<128x128xf32, #tpu.memory_space<vmem>>, vector<128x128xf32>
    %cst_116 = arith.constant dense<0.000000e+00> : vector<16x128xf32>
    %300 = tpu.matmul %287, %299, %cst_116 {dimension_numbers = #tpu.dot_dimension_numbers<[1], [0], [0], [1], [0, 0, 1, 1], [], []>} : vector<16x128xf32>, vector<128x128xf32>, vector<16x128xf32> -> vector<16x128xf32>
    %301 = vector.broadcast %298 : vector<16x1xf32> to vector<16x128xf32>
    %302 = arith.mulf %301, %300 : vector<16x128xf32>
    %cst_117 = arith.constant dense<0.000000e+00> : vector<16x128xf32>
    %303 = tpu.matmul %293, %302, %cst_117 {dimension_numbers = #tpu.dot_dimension_numbers<[1], [0], [0], [1], [0, 0, 1, 1], [], []>} : vector<16x16xf32>, vector<16x128xf32>, vector<16x128xf32> -> vector<16x128xf32>
    %cst_118 = arith.constant 2.000000e+00 : f32
    %304 = vector.broadcast %cst_118 : f32 to vector<16x128xf32>
    %305 = arith.mulf %304, %302 : vector<16x128xf32>
    %306 = arith.addf %303, %305 : vector<16x128xf32>
    %307 = vector.broadcast %298 : vector<16x1xf32> to vector<16x128xf32>
    %308 = arith.mulf %307, %306 : vector<16x128xf32>
    %c0_119 = arith.constant 0 : index
    %c0_120 = arith.constant 0 : index
    %309 = vector.load %arg10[%c0_119, %c0_120] : memref<1x128xf32, #tpu.memory_space<vmem>>, vector<1x128xf32>
    %310 = vector.broadcast %309 : vector<1x128xf32> to vector<16x128xf32>
    %311 = arith.addf %308, %310 : vector<16x128xf32>
    %cst_121 = arith.constant 0.000000e+00 : f32
    %312 = vector.broadcast %cst_121 : f32 to vector<16x128xf32>
    %313 = arith.maximumf %311, %312 : vector<16x128xf32>
    %c4_i32_122 = arith.constant 4 : i32
    %314 = vector.broadcast %c4_i32_122 : i32 to vector<16x1xi32>
    %315 = arith.cmpi slt, %8, %314 : vector<16x1xi32>
    %cst_123 = arith.constant 1.000000e+00 : f32
    %cst_124 = arith.constant 0.000000e+00 : f32
    %316 = vector.broadcast %cst_123 : f32 to vector<16x1xf32>
    %317 = vector.broadcast %cst_124 : f32 to vector<16x1xf32>
    %318 = arith.select %315, %316, %317 : vector<16x1xi1>, vector<16x1xf32>
    %319 = vector.broadcast %318 : vector<16x1xf32> to vector<16x128xf32>
    %320 = arith.mulf %313, %319 : vector<16x128xf32>
    %cst_125 = arith.constant dense<0.000000e+00> : vector<16x128xf32>
    %321 = tpu.matmul %272, %320, %cst_125 {dimension_numbers = #tpu.dot_dimension_numbers<[1], [0], [0], [1], [0, 0, 1, 1], [], []>} : vector<16x16xf32>, vector<16x128xf32>, vector<16x128xf32> -> vector<16x128xf32>
    %322 = arith.addf %219, %321 : vector<16x128xf32>
    %c0_126 = arith.constant 0 : index
    %c0_127 = arith.constant 0 : index
    %323 = vector.load %arg11[%c0_126, %c0_127] : memref<128x128xf32, #tpu.memory_space<vmem>>, vector<128x128xf32>
    %cst_128 = arith.constant dense<0.000000e+00> : vector<16x128xf32>
    %324 = tpu.matmul %322, %323, %cst_128 {dimension_numbers = #tpu.dot_dimension_numbers<[1], [0], [0], [1], [0, 0, 1, 1], [], []>} : vector<16x128xf32>, vector<128x128xf32>, vector<16x128xf32> -> vector<16x128xf32>
    %325 = vector.broadcast %204 : vector<16x1xf32> to vector<16x128xf32>
    %326 = arith.mulf %325, %324 : vector<16x128xf32>
    %cst_129 = arith.constant dense<0.000000e+00> : vector<16x128xf32>
    %327 = tpu.matmul %199, %326, %cst_129 {dimension_numbers = #tpu.dot_dimension_numbers<[1], [0], [0], [1], [0, 0, 1, 1], [], []>} : vector<16x16xf32>, vector<16x128xf32>, vector<16x128xf32> -> vector<16x128xf32>
    %cst_130 = arith.constant 2.000000e+00 : f32
    %328 = vector.broadcast %cst_130 : f32 to vector<16x128xf32>
    %329 = arith.mulf %328, %326 : vector<16x128xf32>
    %330 = arith.addf %327, %329 : vector<16x128xf32>
    %331 = vector.broadcast %204 : vector<16x1xf32> to vector<16x128xf32>
    %332 = arith.mulf %331, %330 : vector<16x128xf32>
    %c0_131 = arith.constant 0 : index
    %c0_132 = arith.constant 0 : index
    %333 = vector.load %arg14[%c0_131, %c0_132] : memref<1x128xf32, #tpu.memory_space<vmem>>, vector<1x128xf32>
    %334 = vector.broadcast %333 : vector<1x128xf32> to vector<16x128xf32>
    %335 = arith.addf %332, %334 : vector<16x128xf32>
    %cst_133 = arith.constant 0.000000e+00 : f32
    %336 = vector.broadcast %cst_133 : f32 to vector<16x128xf32>
    %337 = arith.maximumf %335, %336 : vector<16x128xf32>
    %c8_i32_134 = arith.constant 8 : i32
    %338 = vector.broadcast %c8_i32_134 : i32 to vector<16x1xi32>
    %339 = arith.cmpi slt, %8, %338 : vector<16x1xi32>
    %cst_135 = arith.constant 1.000000e+00 : f32
    %cst_136 = arith.constant 0.000000e+00 : f32
    %340 = vector.broadcast %cst_135 : f32 to vector<16x1xf32>
    %341 = vector.broadcast %cst_136 : f32 to vector<16x1xf32>
    %342 = arith.select %339, %340, %341 : vector<16x1xi1>, vector<16x1xf32>
    %343 = vector.broadcast %342 : vector<16x1xf32> to vector<16x128xf32>
    %344 = arith.mulf %337, %343 : vector<16x128xf32>
    %cst_137 = arith.constant dense<0.000000e+00> : vector<16x128xf32>
    %345 = tpu.matmul %178, %344, %cst_137 {dimension_numbers = #tpu.dot_dimension_numbers<[1], [0], [0], [1], [0, 0, 1, 1], [], []>} : vector<16x16xf32>, vector<16x128xf32>, vector<16x128xf32> -> vector<16x128xf32>
    %346 = arith.addf %125, %345 : vector<16x128xf32>
    %c0_138 = arith.constant 0 : index
    %c0_139 = arith.constant 0 : index
    %347 = vector.load %arg12[%c0_138, %c0_139] : memref<128x128xf32, #tpu.memory_space<vmem>>, vector<128x128xf32>
    %cst_140 = arith.constant dense<0.000000e+00> : vector<16x128xf32>
    %348 = tpu.matmul %346, %347, %cst_140 {dimension_numbers = #tpu.dot_dimension_numbers<[1], [0], [0], [1], [0, 0, 1, 1], [], []>} : vector<16x128xf32>, vector<128x128xf32>, vector<16x128xf32> -> vector<16x128xf32>
    %349 = vector.broadcast %110 : vector<16x1xf32> to vector<16x128xf32>
    %350 = arith.mulf %349, %348 : vector<16x128xf32>
    %cst_141 = arith.constant dense<0.000000e+00> : vector<16x128xf32>
    %351 = tpu.matmul %105, %350, %cst_141 {dimension_numbers = #tpu.dot_dimension_numbers<[1], [0], [0], [1], [0, 0, 1, 1], [], []>} : vector<16x16xf32>, vector<16x128xf32>, vector<16x128xf32> -> vector<16x128xf32>
    %cst_142 = arith.constant 2.000000e+00 : f32
    %352 = vector.broadcast %cst_142 : f32 to vector<16x128xf32>
    %353 = arith.mulf %352, %350 : vector<16x128xf32>
    %354 = arith.addf %351, %353 : vector<16x128xf32>
    %355 = vector.broadcast %110 : vector<16x1xf32> to vector<16x128xf32>
    %356 = arith.mulf %355, %354 : vector<16x128xf32>
    %c0_143 = arith.constant 0 : index
    %c0_144 = arith.constant 0 : index
    %357 = vector.load %arg15[%c0_143, %c0_144] : memref<1x128xf32, #tpu.memory_space<vmem>>, vector<1x128xf32>
    %358 = vector.broadcast %357 : vector<1x128xf32> to vector<16x128xf32>
    %359 = arith.addf %356, %358 : vector<16x128xf32>
    %cst_145 = arith.constant 0.000000e+00 : f32
    %360 = vector.broadcast %cst_145 : f32 to vector<16x128xf32>
    %361 = arith.maximumf %359, %360 : vector<16x128xf32>
    %c16_i32_146 = arith.constant 16 : i32
    %362 = vector.broadcast %c16_i32_146 : i32 to vector<16x1xi32>
    %363 = arith.cmpi slt, %8, %362 : vector<16x1xi32>
    %cst_147 = arith.constant 1.000000e+00 : f32
    %cst_148 = arith.constant 0.000000e+00 : f32
    %364 = vector.broadcast %cst_147 : f32 to vector<16x1xf32>
    %365 = vector.broadcast %cst_148 : f32 to vector<16x1xf32>
    %366 = arith.select %363, %364, %365 : vector<16x1xi1>, vector<16x1xf32>
    %367 = vector.broadcast %366 : vector<16x1xf32> to vector<16x128xf32>
    %368 = arith.mulf %361, %367 : vector<16x128xf32>
    %cst_149 = arith.constant dense<0.000000e+00> : vector<16x128xf32>
    %369 = tpu.matmul %84, %368, %cst_149 {dimension_numbers = #tpu.dot_dimension_numbers<[1], [0], [0], [1], [0, 0, 1, 1], [], []>} : vector<16x16xf32>, vector<16x128xf32>, vector<16x128xf32> -> vector<16x128xf32>
    %370 = arith.addf %31, %369 : vector<16x128xf32>
    %c0_150 = arith.constant 0 : index
    %c0_151 = arith.constant 0 : index
    %371 = vector.load %arg13[%c0_150, %c0_151] : memref<128x128xf32, #tpu.memory_space<vmem>>, vector<128x128xf32>
    %cst_152 = arith.constant dense<0.000000e+00> : vector<16x128xf32>
    %372 = tpu.matmul %370, %371, %cst_152 {dimension_numbers = #tpu.dot_dimension_numbers<[1], [0], [0], [1], [0, 0, 1, 1], [], []>} : vector<16x128xf32>, vector<128x128xf32>, vector<16x128xf32> -> vector<16x128xf32>
    %373 = vector.broadcast %16 : vector<16x1xf32> to vector<16x128xf32>
    %374 = arith.mulf %373, %372 : vector<16x128xf32>
    %cst_153 = arith.constant dense<0.000000e+00> : vector<16x128xf32>
    %375 = tpu.matmul %10, %374, %cst_153 {dimension_numbers = #tpu.dot_dimension_numbers<[1], [0], [0], [1], [0, 0, 1, 1], [], []>} : vector<16x16xf32>, vector<16x128xf32>, vector<16x128xf32> -> vector<16x128xf32>
    %cst_154 = arith.constant 2.000000e+00 : f32
    %376 = vector.broadcast %cst_154 : f32 to vector<16x128xf32>
    %377 = arith.mulf %376, %374 : vector<16x128xf32>
    %378 = arith.addf %375, %377 : vector<16x128xf32>
    %379 = vector.broadcast %16 : vector<16x1xf32> to vector<16x128xf32>
    %380 = arith.mulf %379, %378 : vector<16x128xf32>
    %c0_155 = arith.constant 0 : index
    %c0_156 = arith.constant 0 : index
    %381 = vector.load %arg16[%c0_155, %c0_156] : memref<1x128xf32, #tpu.memory_space<vmem>>, vector<1x128xf32>
    %382 = vector.broadcast %381 : vector<1x128xf32> to vector<16x128xf32>
    %383 = arith.addf %380, %382 : vector<16x128xf32>
    %384 = math.tanh %383 : vector<16x128xf32>
    %c0_157 = arith.constant 0 : index
    %c0_158 = arith.constant 0 : index
    %385 = vector.load %arg20[%c0_157, %c0_158] : memref<16x128xf32, #tpu.memory_space<vmem>>, vector<16x128xf32>
    tpu.vector_store %arg20[%c0_157, %c0_158], %384 {strides = array<i32>} : memref<16x128xf32, #tpu.memory_space<vmem>>, vector<16x128xf32>,
    return
  }
  func.func @transform_0(%arg0: i32) -> (i32, i32) {
    %c0_i32 = arith.constant 0 : i32
    %c0_i32_0 = arith.constant 0 : i32
    %c0_i32_1 = arith.constant 0 : i32
    return %c0_i32, %c0_i32_0 : i32, i32
  }
  func.func @transform_1(%arg0: i32) -> (i32, i32) {
    %c0_i32 = arith.constant 0 : i32
    %c0_i32_0 = arith.constant 0 : i32
    %c0_i32_1 = arith.constant 0 : i32
    return %c0_i32, %c0_i32_0 : i32, i32
  }
  func.func @transform_2(%arg0: i32) -> (i32, i32) {
    %c0_i32 = arith.constant 0 : i32
    %c0_i32_0 = arith.constant 0 : i32
    %c0_i32_1 = arith.constant 0 : i32
    return %c0_i32, %c0_i32_0 : i32, i32
  }
  func.func @transform_3(%arg0: i32) -> (i32, i32) {
    %c0_i32 = arith.constant 0 : i32
    %c0_i32_0 = arith.constant 0 : i32
    %c0_i32_1 = arith.constant 0 : i32
    return %c0_i32, %c0_i32_0 : i32, i32
  }
  func.func @transform_4(%arg0: i32) -> (i32, i32) {
    %c0_i32 = arith.constant 0 : i32
    %c0_i32_0 = arith.constant 0 : i32
    %c0_i32_1 = arith.constant 0 : i32
    return %c0_i32, %c0_i32_0 : i32, i32
  }
  func.func @transform_5(%arg0: i32) -> (i32, i32) {
    %c0_i32 = arith.constant 0 : i32
    %c0_i32_0 = arith.constant 0 : i32
    %c0_i32_1 = arith.constant 0 : i32
    return %c0_i32, %c0_i32_0 : i32, i32
  }
  func.func @transform_6(%arg0: i32) -> (i32, i32) {
    %c0_i32 = arith.constant 0 : i32
    %c0_i32_0 = arith.constant 0 : i32
    %c0_i32_1 = arith.constant 0 : i32
    return %c0_i32, %c0_i32_0 : i32, i32
  }
  func.func @transform_7(%arg0: i32) -> (i32, i32) {
    %c0_i32 = arith.constant 0 : i32
    %c0_i32_0 = arith.constant 0 : i32
    %c0_i32_1 = arith.constant 0 : i32
    return %c0_i32, %c0_i32_0 : i32, i32
  }
  func.func @transform_8(%arg0: i32) -> (i32, i32) {
    %c0_i32 = arith.constant 0 : i32
    %c0_i32_0 = arith.constant 0 : i32
    %c0_i32_1 = arith.constant 0 : i32
    return %c0_i32, %c0_i32_0 : i32, i32
  }
  func.func @transform_9(%arg0: i32) -> (i32, i32) {
    %c0_i32 = arith.constant 0 : i32
    %c0_i32_0 = arith.constant 0 : i32
    %c0_i32_1 = arith.constant 0 : i32
    return %c0_i32, %c0_i32_0 : i32, i32
  }
  func.func @transform_10(%arg0: i32) -> (i32, i32) {
    %c0_i32 = arith.constant 0 : i32
    %c0_i32_0 = arith.constant 0 : i32
    %c0_i32_1 = arith.constant 0 : i32
    return %c0_i32, %c0_i32_0 : i32, i32
  }
  func.func @transform_11(%arg0: i32) -> (i32, i32) {
    %c0_i32 = arith.constant 0 : i32
    %c0_i32_0 = arith.constant 0 : i32
    %c0_i32_1 = arith.constant 0 : i32
    return %c0_i32, %c0_i32_0 : i32, i32
  }
  func.func @transform_12(%arg0: i32) -> (i32, i32) {
    %c0_i32 = arith.constant 0 : i32
    %c0_i32_0 = arith.constant 0 : i32
    %c0_i32_1 = arith.constant 0 : i32
    return %c0_i32, %c0_i32_0 : i32, i32
  }
  func.func @transform_13(%arg0: i32) -> (i32, i32) {
    %c0_i32 = arith.constant 0 : i32
    %c0_i32_0 = arith.constant 0 : i32
    %c0_i32_1 = arith.constant 0 : i32
    return %c0_i32, %c0_i32_0 : i32, i32
  }
  func.func @transform_14(%arg0: i32) -> (i32, i32) {
    %c0_i32 = arith.constant 0 : i32
    %c0_i32_0 = arith.constant 0 : i32
    %c0_i32_1 = arith.constant 0 : i32
    return %c0_i32, %c0_i32_0 : i32, i32
  }
  func.func @transform_15(%arg0: i32) -> (i32, i32) {
    %c0_i32 = arith.constant 0 : i32
    %c0_i32_0 = arith.constant 0 : i32
    %c0_i32_1 = arith.constant 0 : i32
    return %c0_i32, %c0_i32_0 : i32, i32
  }
  func.func @transform_16(%arg0: i32) -> (i32, i32) {
    %c0_i32 = arith.constant 0 : i32
    %c0_i32_0 = arith.constant 0 : i32
    %c0_i32_1 = arith.constant 0 : i32
    return %c0_i32, %c0_i32_0 : i32, i32
  }
  func.func @transform_17(%arg0: i32) -> (i32, i32) {
    %c0_i32 = arith.constant 0 : i32
    %c0_i32_0 = arith.constant 0 : i32
    %c0_i32_1 = arith.constant 0 : i32
    return %c0_i32, %c0_i32_0 : i32, i32
  }
  func.func @transform_18(%arg0: i32) -> (i32, i32) {
    %c0_i32 = arith.constant 0 : i32
    %c0_i32_0 = arith.constant 0 : i32
    %c0_i32_1 = arith.constant 0 : i32
    return %c0_i32, %c0_i32_0 : i32, i32
  }
  func.func @transform_19(%arg0: i32) -> (i32, i32) {
    %c0_i32 = arith.constant 0 : i32
    %c0_i32_0 = arith.constant 0 : i32
    %c0_i32_1 = arith.constant 0 : i32
    return %c0_i32, %c0_i32_0 : i32, i32
  }
}

</mosaic_0001>

<bundles_post_ra>
// kernel: tpu_custom_call.1
= control target key start
LH: loop header
LB: loop body
LE: loop exit
PB: predicated region body
PF: predicated region fallthrough
CT: control target
= control target key end

     0   :  { %s2607_s0 = inlined_call_operand.hbm [shape: f32[16,16], index: 0, kind: input, shape index: {}]   ;;  %s2608_s1 = inlined_call_operand.hbm [shape: f32[16,128], index: 1, kind: input, shape index: {}]   ;;  %s2609_s2 = inlined_call_operand.hbm [shape: f32[128,128], index: 2, kind: input, shape index: {}]   ;;  %s2610_s3 = inlined_call_operand.hbm [shape: f32[128,128], index: 3, kind: input, shape index: {}]   ;;  %s2611_s4 = inlined_call_operand.hbm [shape: f32[128,128], index: 4, kind: input, shape index: {}]   ;;  %s2612_s5 = inlined_call_operand.hbm [shape: f32[128,128], index: 5, kind: input, shape index: {}]   ;;  %s2613_s6 = inlined_call_operand.vmem [shape: f32[1,128], index: 6, kind: input, shape index: {}]   ;;  %s2614_s7 = inlined_call_operand.vmem [shape: f32[1,128], index: 7, kind: input, shape index: {}]   ;;  %s2615_s8 = inlined_call_operand.vmem [shape: f32[1,128], index: 8, kind: input, shape index: {}]   ;;  %s2616_s9 = inlined_call_operand.vmem [shape: f32[1,128], index: 9, kind: input, shape index: {}]   ;;  %s2617_s10 = inlined_call_operand.hbm [shape: f32[128,128], index: 10, kind: input, shape index: {}]   ;;  %s2618_s11 = inlined_call_operand.hbm [shape: f32[128,128], index: 11, kind: input, shape index: {}]   ;;  %s2619_s12 = inlined_call_operand.hbm [shape: f32[128,128], index: 12, kind: input, shape index: {}]   ;;  %s2620_s13 = inlined_call_operand.vmem [shape: f32[1,128], index: 13, kind: input, shape index: {}]   ;;  %s2621_s14 = inlined_call_operand.vmem [shape: f32[1,128], index: 14, kind: input, shape index: {}]   ;;  %s2622_s15 = inlined_call_operand.vmem [shape: f32[1,128], index: 15, kind: input, shape index: {}]   ;;  %s2623_s16 = inlined_call_operand.vmem [shape: f32[1,128], index: 16, kind: input, shape index: {}]   ;;  %s2624_s17 = inlined_call_operand.vmem [shape: f32[1,128], index: 17, kind: input, shape index: {}]   ;;  %s2625_s18 = inlined_call_operand.vmem [shape: f32[1,128], index: 18, kind: input, shape index: {}]   ;;  %s2626_s19 = inlined_call_operand.hbm [shape: f32[16,128], index: 19, kind: output, shape index: {}]  }
   0x1   :  { %2629 = sst [smem:[#allocation24_spill]] %s2607_s0 }
   0x2   :  { %2630 = sst [smem:[#allocation25_spill]] %s2608_s1 }
   0x3   :  { %2631 = sst [smem:[#allocation26_spill]] %s2609_s2 }
   0x4   :  { %2632 = sst [smem:[#allocation27_spill]] %s2610_s3 }
   0x5   :  { %24 = vsyncpa [#allocation3], 0 }
   0x6   :  { %25 = vsyncpa [#allocation6], 0 }
   0x7   :  { %26 = vsyncpa [#allocation9], 0 }
   0x8   :  { %27 = vsyncpa [#allocation12], 0 }
   0x9   :  { %28 = vsyncpa [#allocation15], 0 }
   0xa   :  { %29 = vsyncpa [#allocation4], 0  ;;  %s2633_s20 = sld [smem:[#allocation25_spill]]  ;;  %s2012_s1 = smov [#allocation5]  }
   0xb   :  { %s49_s22 = sshll.u32 %s2012_s1, 4  ;;  %s2634_s24 = sld [smem:[#allocation27_spill]]  ;;  %s50_s22 = int_to_ptr.vmem [resolvable:$true] %s49_s22 }
   0xc   :  { %s2013_s3 = smov 128   ;;  %s2014_s26 = smov 8  }
   0xd   :  { %s2015_s27 = smov [#allocation8]   ;;  %s99_s30 = sshll.u32 %s2612_s5, 4  ;;  %s100_s30 = int_to_ptr.hbm [resolvable:$true] %s99_s30 }
   0xe   :  { %s75_s28 = sshll.u32 %s2015_s27, 4  ;;  %s133_s2 = sshll.u32 %s2618_s11, 4  ;;  %s76_s28 = int_to_ptr.vmem [resolvable:$true] %s75_s28  ;;  %s134_s2 = int_to_ptr.hbm [resolvable:$true] %s133_s2 }
   0xf   :  { %s2016_s23 = smov [#allocation11]   ;;  %s2635_s29 = sld [smem:[#allocation24_spill]] }
  0x10   :  { %s47_s21 = sshll.u32 %s2633_s20, 4  ;;  %s2018_s1 = smov [#allocation2]   ;;  %s48_s21 = int_to_ptr.hbm [resolvable:$true] %s47_s21 }
  0x11   :  { %s73_s25 = sshll.u32 %s2634_s24, 4  ;;  %s101_s24 = sshll.u32 %s2016_s23, 4  ;;  %s74_s25 = int_to_ptr.hbm [resolvable:$true] %s73_s25  ;;  %s102_s24 = int_to_ptr.vmem [resolvable:$true] %s101_s24 }
  0x12   :  { %55 = dma.hbm_to_vmem [thread:$0]  %s48_s21, 256, %s50_s22, [#allocation6], %s2013_s3, %s2013_s3, %s2014_s26  }
  0x13   :  { %81 = dma.hbm_to_vmem [thread:$0]  %s74_s25, 2048, %s76_s28, [#allocation9], %s2013_s3, %s2013_s3, %s2014_s26  }
  0x14   :  { %107 = dma.hbm_to_vmem [thread:$0]  %s100_s30, 2048, %s102_s24, [#allocation12], %s2013_s3, %s2013_s3, %s2014_s26  }
  0x15   :  { %s2017_s21 = smov [#allocation14]   ;;  %s34_s0 = sshll.u32 %s2635_s29, 4  ;;  %s35_s0 = int_to_ptr.hbm [resolvable:$true] %s34_s0 }
  0x16   :  { %s135_s5 = sshll.u32 %s2017_s21, 4  ;;  %s2636_s28 = sld [smem:[#allocation26_spill]]  ;;  %s136_s5 = int_to_ptr.vmem [resolvable:$true] %s135_s5 }
  0x17   :  { %141 = dma.hbm_to_vmem [thread:$0]  %s134_s2, 2048, %s136_s5, [#allocation15], %s2013_s3, %s2013_s3, %s2014_s26  }
  0x18   :  { %s36_s23 = sshll.u32 %s2018_s1, 4  ;;  %s2019_s30 = smov [#allocation7]   ;;  %s37_s23 = int_to_ptr.vmem [resolvable:$true] %s36_s23 }
  0x19   :  { %42 = dma.hbm_to_vmem [thread:$0]  %s35_s0, 256, %s37_s23, [#allocation3], %s2013_s3, %s2013_s3, %s2014_s26  }
  0x1a   :  { %s62_s24 = sshll.u32 %s2019_s30, 4  ;;  %s86_s27 = sshll.u32 %s2611_s4, 4  ;;  %s63_s24 = int_to_ptr.vmem [resolvable:$true] %s62_s24  ;;  %s87_s27 = int_to_ptr.hbm [resolvable:$true] %s86_s27 }
  0x1b   :  { %s120_s29 = sshll.u32 %s2617_s10, 4  ;;  %s2020_s11 = smov [#allocation10]   ;;  %s121_s29 = int_to_ptr.hbm [resolvable:$true] %s120_s29 }
  0x1c   :  { %s60_s20 = sshll.u32 %s2636_s28, 4  ;;  %s88_s25 = sshll.u32 %s2020_s11, 4  ;;  %s61_s20 = int_to_ptr.hbm [resolvable:$true] %s60_s20  ;;  %s89_s25 = int_to_ptr.vmem [resolvable:$true] %s88_s25 }
  0x1d   :  { %68 = dma.hbm_to_vmem [thread:$0]  %s61_s20, 2048, %s63_s24, [#allocation6], %s2013_s3, %s2013_s3, %s2014_s26  }
  0x1e   :  { %94 = dma.hbm_to_vmem [thread:$0]  %s87_s27, 2048, %s89_s25, [#allocation9], %s2013_s3, %s2013_s3, %s2014_s26  }
  0x1f   :  { %s2021_s0 = smov [#allocation13]   ;;  %s146_s23 = sshll.u32 %s2619_s12, 4  ;;  %s147_s23 = int_to_ptr.hbm [resolvable:$true] %s146_s23 }
  0x20   :  { %s122_s4 = sshll.u32 %s2021_s0, 4  ;;  %s2022_s10 = smov [#allocation16]   ;;  %s123_s4 = int_to_ptr.vmem [resolvable:$true] %s122_s4 }
  0x21   :  { %128 = dma.hbm_to_vmem [thread:$0]  %s121_s29, 2048, %s123_s4, [#allocation12], %s2013_s3, %s2013_s3, %s2014_s26  }
  0x22   :  { %s148_s20 = sshll.u32 %s2022_s10, 4  ;;  %s149_s20 = int_to_ptr.vmem [resolvable:$true] %s148_s20 }
  0x23   :  { %154 = dma.hbm_to_vmem [thread:$0]  %s147_s23, 2048, %s149_s20, [#allocation15], %s2013_s3, %s2013_s3, %s2014_s26  }
  0x24   :  { %2000 = dma.done.wait [#allocation3], 256  }
  0x25   :  { %2001 = vsyncadd [#allocation3], 4294967040 }
  0x26   :  { %2002 = dma.done.wait [#allocation6], 2304  }
  0x27   :  { %2003 = vsyncadd [#allocation6], 4294964992 }
  0x28   :  { %2004 = dma.done.wait [#allocation9], 4096  }
  0x29   :  { %2005 = vsyncadd [#allocation9], 4294963200 }
  0x2a   :  { %2006 = dma.done.wait [#allocation12], 4096  }
  0x2b   :  { %2007 = vsyncadd [#allocation12], 4294963200 }
  0x2c   :  { %2008 = dma.done.wait [#allocation15], 4096  }
  0x2d   :  { %2009 = vsyncadd [#allocation15], 4294963200  ;;  %vm219_vm0 = vcmask 130048   ;;  %v263_v0 = vld [vmem:[#allocation7 + $0x78] sm:$0xff]  ;;  %v262_v1 = vld [vmem:[#allocation7 + $0x70] sm:$0xff]  ;;  %vm365_vm1 = vcmask 1040384   ;;  %v203_v47 = vlaneseq }
  0x2e   :  { %264 = vmatpush.msra.mxu0 %v263_v0  ;;  %v2180_v2 = vld [vmem:[#allocation2 + $0x8] sm:$0xff]  ;;  %v2184_v5 = vld [vmem:[#allocation2] sm:$0xff]  ;;  %v259_v7 = vld [vmem:[#allocation7 + $0x58] sm:$0xff]  ;;  %s2025_s20 = smov [#allocation17]   ;;  %s1613_s21 = sshll.u32 %s2626_s19, 4  ;;  %s1614_s21 = int_to_ptr.hbm [resolvable:$true] %s1613_s21 }
  0x2f   :  { %v261_v3 = vld [vmem:[#allocation7 + $0x68] sm:$0xff]  ;;  %v223_v4 = vsel %vm219_vm0, %v2180_v2, 0.0  ;;  %v260_v6 = vld [vmem:[#allocation7 + $0x60] sm:$0xff]  ;;  %v258_v8 = vld [vmem:[#allocation7 + $0x50] sm:$0xff]  ;;  %v220_v9 = vsel %vm219_vm0, %v2184_v5, 0.0  ;;  %v2202_v48 = vshrl.u32 %v203_v47, 7 }
  0x30   :  { %265 = vmatpush.msra.mxu0 %v262_v1  ;;  %224 = vadd.xlane.f32.xlu0 %v223_v4  ;;  %v257_v10 = vld [vmem:[#allocation7 + $0x48] sm:$0xff]  ;;  %v256_v11 = vld [vmem:[#allocation7 + $0x40] sm:$0xff]  ;;  %v255_v12 = vld [vmem:[#allocation7 + $0x38] sm:$0xff]  ;;  %v2204_v49 = vand.u32 127, %v203_v47  ;;  %s1611_s12 = sshll.u32 %s2025_s20, 4  ;;  %s1612_s12 = int_to_ptr.vmem [resolvable:$true] %s1611_s12 }
  0x31   :  { %v254_v13 = vld [vmem:[#allocation7 + $0x30] sm:$0xff]  ;;  %v253_v14 = vld [vmem:[#allocation7 + $0x28] sm:$0xff]  ;;  %v252_v15 = vld [vmem:[#allocation7 + $0x20] sm:$0xff]  ;;  %v2207_v50 = vadd.s32 8, %v2202_v48 }
  0x32   :  { %266 = vmatpush.msra.mxu0 %v261_v3  ;;  %v251_v16 = vld [vmem:[#allocation7 + $0x18] sm:$0xff]  ;;  %v250_v17 = vld [vmem:[#allocation7 + $0x10] sm:$0xff]  ;;  %v249_v18 = vld [vmem:[#allocation7 + $0x8] sm:$0xff]  ;;  %vm2211_vm8 = vcmp.eq.s32.totalorder %v2202_v48, %v2204_v49  ;;  %vm412_vm15 = vcmp.lt.s32.totalorder %v2202_v48, %v2204_v49 }
  0x33   :  { %v248_v19 = vld [vmem:[#allocation7] sm:$0xff]  ;;  %v217_v20 = vld [vmem:[#allocation5] sm:$0xff]  ;;  %v218_v21 = vld [vmem:[#allocation5 + $0x8] sm:$0xff]  ;;  %vm2217_vm9 = vcmp.eq.s32.totalorder %v2207_v50, %v2204_v49  ;;  %v330_v54 = vsel %vm2211_vm8, 1.0, %v2184_v5 }
  0x34   :  { %267 = vmatpush.msra.mxu0 %v260_v6  ;;  %v363_v26 = vld [vmem:[%s2623_s16] sm:$0x1]  ;;  %v331_v53 = vsel %vm2217_vm9, 1.0, %v2180_v2  ;;  %vm1636_vm13 = vmneg %vm2217_vm9 }
  0x35   :  { %v364_v27 = vmul.f32 %v363_v26, %v363_v26  ;;  %352 = vmatpush.msra.mxu2 %v331_v53  ;;  %v1710_v60 = vld [vmem:[%s2613_s6] ss:$0 sm:$0xff]  ;;  %vm1638_vm14 = vmneg %vm2211_vm8 }
  0x36   :  { %268 = vmatpush.msra.mxu0 %v259_v7  ;;  %v1715_v52 = vld [vmem:[%s2625_s18] ss:$0 sm:$0xff] }
  0x37   :  { %v366_v29 = vsel %vm365_vm1, %v364_v27, 0.0  ;;  %353 = vmatpush.msra.mxu2 %v330_v54 }
  0x38   :  { %269 = vmatpush.msra.mxu0 %v258_v8  ;;  %221 = vadd.xlane.f32.xlu0 %v220_v9 }
  0x39   :  { %367 = vadd.xlane.f32.xlu1 %v366_v29  ;;  %1632 = vmatmul.msk.f32.vlgmr.msra.gmra.mxu2 %vm219_vm0, %v330_v54  ;;  %v577_v54 = vld [vmem:[#allocation8 + $0x58] sm:$0xff] }
  0x3a   :  { %270 = vmatpush.msra.mxu0 %v257_v10 }
  0x3c   :  { %271 = vmatpush.msra.mxu0 %v256_v11 }
  0x3e   :  { %272 = vmatpush.msra.mxu0 %v255_v12 }
  0x40   :  { %273 = vmatpush.msra.mxu0 %v254_v13 }
  0x41   :  { %1633 = vmatmul.msk.f32.gmra.mxu2 %vm219_vm0, %v331_v53 }
  0x42   :  { %274 = vmatpush.msra.mxu0 %v253_v14 }
  0x44   :  { %275 = vmatpush.msra.mxu0 %v252_v15 }
  0x46   :  { %276 = vmatpush.msra.mxu0 %v251_v16 }
  0x48   :  { %277 = vmatpush.msra.mxu0 %v250_v17 }
  0x4a   :  { %278 = vmatpush.msra.mxu0 %v249_v18 }
  0x4c   :  { %279 = vmatpush.msra.mxu0 %v248_v19 }
  0x4d   :  { %280 = vmatmul.f32.vlgmr.msra.gmra.mxu0 %v217_v20 }
  0x55   :  { %283 = vmatmul.f32.gmra.mxu0 %v218_v21 }
  0xa3   :  { %v225_v22 = vpop.xlane.xlu0 %224 }
  0xa4   :  { %v227_v24 = vadd.f32 2.0, %v225_v22  ;;  %v2023_v22 = vmov 0.0  }
  0xa6   :  { %1720 = vrsqrt.f32 %v227_v24  ;;  %vm244_vm2 = vweird.f32 %v227_v24 }
  0xab   :  { %v222_v23 = vpop.xlane.xlu0 %221 }
  0xac   :  { %v226_v25 = vadd.f32 2.0, %v222_v23  ;;  %v1721_v28 = vpop.eup %1720  ;;  %v368_v7 = vpop.xlane.xlu1 %367  ;;  %v2256_v23 = vsel %vm2217_vm9, 1.0, %v2023_v22 }
  0xad   :  { %v239_v31 = vmul.f32 %v1721_v28, %v227_v24  ;;  %vm245_vm3 = vweird.f32 %v1721_v28  ;;  %vm375_vm10 = vweird.f32 %v368_v7  ;;  %v2261_v24 = vsel %vm2211_vm8, 1.0, %v2023_v22 }
  0xae   :  { %1722 = vrsqrt.f32 %v226_v25  ;;  %vm234_vm4 = vweird.f32 %v226_v25  ;;  %vm246_vm6 = vmor %vm244_vm2, %vm245_vm3  ;;  %vm413_vm2 = vcmp.lt.s32.totalorder %v2207_v50, %v2204_v49 }
  0xaf   :  { %v240_v33 = vmul.f32 %v1721_v28, %v239_v31  ;;  %1724 = vrsqrt.f32 %v368_v7 }
  0xb1   :  { %v241_v35 = vmul.f32 0.5, %v240_v33 }
  0xb3   :  { %v242_v37 = vsub.f32 1.5, %v241_v35 }
  0xb4   :  { %v1723_v30 = vpop.eup %1722 }
  0xb5   :  { %v229_v32 = vmul.f32 %v1723_v30, %v226_v25  ;;  %vm235_vm5 = vweird.f32 %v1723_v30  ;;  %v243_v40 = vmul.f32 %v1721_v28, %v242_v37  ;;  %v1725_v8 = vpop.eup %1724 }
  0xb6   :  { %vm236_vm7 = vmor %vm234_vm4, %vm235_vm5  ;;  %v370_v9 = vmul.f32 %v1725_v8, %v368_v7  ;;  %vm376_vm11 = vweird.f32 %v1725_v8 }
  0xb7   :  { %v230_v34 = vmul.f32 %v1723_v30, %v229_v32  ;;  %v2192_v42 = vsel %vm246_vm6, %v1721_v28, %v243_v40  ;;  %vm377_vm12 = vmor %vm375_vm10, %vm376_vm11  ;;  %v581_v40 = vld [vmem:[#allocation8 + $0x78] sm:$0xff] }
  0xb8   :  { %v371_v10 = vmul.f32 %v1725_v8, %v370_v9 }
  0xb9   :  { %v231_v36 = vmul.f32 0.5, %v230_v34 }
  0xba   :  { %v372_v11 = vmul.f32 0.5, %v371_v10  ;;  %v2295_v10 = vcvt.s32.f32 %v2207_v50 }
  0xbb   :  { %v232_v39 = vsub.f32 1.5, %v231_v36 }
  0xbc   :  { %v373_v12 = vsub.f32 1.5, %v372_v11  ;;  %v355_v14 = vpop.f32.mrf.mxu2 }
  0xbd   :  { %v233_v41 = vmul.f32 %v1723_v30, %v232_v39 }
  0xbe   :  { %v374_v13 = vmul.f32 %v1725_v8, %v373_v12  ;;  %v573_v12 = vld [vmem:[#allocation8 + $0x38] sm:$0xff] }
  0xbf   :  { %v2195_v45 = vsel %vm236_vm7, %v1723_v30, %v233_v41  ;;  %v580_v41 = vld [vmem:[#allocation8 + $0x70] sm:$0xff] }
  0xc0   :  { %v378_v15 = vsel %vm377_vm12, %v1725_v8, %v374_v13  ;;  %v572_v13 = vld [vmem:[#allocation8 + $0x30] sm:$0xff] }
  0xc1   :  { %v388_v16 = vperm.slane %v378_v15, 0  ;;  %v570_v15 = vld [vmem:[#allocation8 + $0x20] sm:$0xff] }
  0xc4   :  { %v358_v21 = vpop.f32.mrf.mxu2 }
  0xca   :  { %v281_v38 = vpop.f32.mrf.mxu0 }
  0xcb   :  { %v287_v46 = vmul.f32 %v281_v38, %v2195_v45 }
  0xcd   :  { %v289_v55 = vmul.f32 2.0, %v287_v46 }
  0xd2   :  { %v284_v43 = vpop.f32.mrf.mxu0 }
  0xd3   :  { %v288_v44 = vmul.f32 %v284_v43, %v2192_v42  ;;  %v579_v43 = vld [vmem:[#allocation8 + $0x68] sm:$0xff] }
  0xd5   :  { %311 = vmatpush.msrb.mxu0 %v288_v44  ;;  %1694 = vmatpush.msra.mxu1 %v288_v44  ;;  %v290_v56 = vmul.f32 2.0, %v288_v44  ;;  %v578_v44 = vld [vmem:[#allocation8 + $0x60] sm:$0xff] }
  0xd7   :  { %312 = vmatpush.msrb.mxu0 %v287_v46  ;;  %1695 = vmatpush.msra.mxu1 %v287_v46 }
  0xd8   :  { %1630 = vmatmul.msk.f32.vlgmr.msrb.gmra.mxu0 %vm219_vm0, %v2184_v5  ;;  %1631 = vmatmul.msk.f32.vlgmr.msra.gmra.mxu1 %vm219_vm0, %v2180_v2  ;;  %v1711_v2 = vld [vmem:[%s2623_s16] ss:$0 sm:$0xff] }
  0xd9   :  { %1637 = vmatpush.msk.msrb.mxu1 %vm1636_vm13, %v358_v21 }
  0xdb   :  { %1639 = vmatpush.msk.msrb.mxu1 %vm1638_vm14, %v355_v14  ;;  %v571_v14 = vld [vmem:[#allocation8 + $0x28] sm:$0xff] }
 0x155   :  { %v314_v57 = vpop.f32.mrf.mxu0  ;;  %v317_v58 = vpop.f32.mrf.mxu1 }
 0x156   :  { %v315_v59 = vadd.f32 %v314_v57, %v289_v55  ;;  %v318_v61 = vadd.f32 %v317_v58, %v290_v56  ;;  %v576_v57 = vld [vmem:[#allocation8 + $0x50] sm:$0xff] }
 0x158   :  { %v320_v62 = vmul.f32 %v315_v59, %v2195_v45  ;;  %v321_v63 = vmul.f32 %v318_v61, %v2192_v42  ;;  %v575_v59 = vld [vmem:[#allocation8 + $0x48] sm:$0xff]  ;;  %v574_v61 = vld [vmem:[#allocation8 + $0x40] sm:$0xff] }
 0x15a   :  { %v326_v0 = vadd.f32 %v1710_v60, %v320_v62  ;;  %v327_v1 = vadd.f32 %v1710_v60, %v321_v63 }
 0x15c   :  { %v2237_v3 = vmax.f32 %v326_v0, 0.0  ;;  %v2239_v4 = vmax.f32 %v327_v1, 0.0  ;;  %v2284_v0 = vcvt.s32.f32 %v2202_v48 }
 0x15e   :  { %v383_v5 = vmul.f32 %v1711_v2, %v2239_v4  ;;  %v382_v6 = vmul.f32 %v1711_v2, %v2237_v3 }
 0x160   :  { %386 = vadd.xlane.f32.xlu2 %v383_v5  ;;  %384 = vadd.xlane.f32.xlu1 %v382_v6 }
 0x1d3   :  { %v387_v17 = vpop.xlane.xlu2 %386  ;;  %v385_v18 = vpop.xlane.xlu1 %384 }
 0x1d4   :  { %v390_v19 = vmul.f32 %v388_v16, %v387_v17  ;;  %v389_v20 = vmul.f32 %v388_v16, %v385_v18  ;;  %v569_v16 = vld [vmem:[#allocation8 + $0x18] sm:$0xff]  ;;  %v568_v17 = vld [vmem:[#allocation8 + $0x10] sm:$0xff]  ;;  %v567_v18 = vld [vmem:[#allocation8 + $0x8] sm:$0xff] }
 0x1d6   :  { %1726 = vtanh.f32 %v390_v19  ;;  %v566_v19 = vld [vmem:[#allocation8] sm:$0xff] }
 0x1d7   :  { %1728 = vtanh.f32 %v389_v20  ;;  %v2302_v20 = vcvt.s32.f32 %v2204_v49 }
 0x1dc   :  { %v1727_v25 = vpop.eup %1726 }
 0x1dd   :  { %v1729_v26 = vpop.eup %1728  ;;  %v398_v27 = vmul.f32 %v1727_v25, %v2256_v23  ;;  %v450_v28 = vmul.f32 %v1727_v25, %v2239_v4 }
 0x1de   :  { %v397_v29 = vmul.f32 %v1729_v26, %v2261_v24  ;;  %v449_v31 = vmul.f32 %v1729_v26, %v2237_v3 }
 0x1df   :  { %v400_v30 = vsel %vm219_vm0, %v398_v27, 0.0  ;;  %471 = vmatpush.msra.mxu3 %v450_v28 }
 0x1e0   :  { %v399_v32 = vsel %vm219_vm0, %v397_v29, 0.0 }
 0x1e1   :  { %v401_v33 = vadd.f32 %v400_v30, %v399_v32  ;;  %472 = vmatpush.msra.mxu3 %v449_v31 }
 0x1e3   :  { %v402_v34 = vrot.slane %v401_v33, 4  ;;  %582 = vmatpush.msrb.mxu3 %v581_v40 }
 0x1e5   :  { %v403_v35 = vadd.f32 %v402_v34, %v401_v33  ;;  %583 = vmatpush.msrb.mxu3 %v580_v41 }
 0x1e7   :  { %v404_v36 = vrot.slane %v403_v35, 2  ;;  %584 = vmatpush.msrb.mxu3 %v579_v43 }
 0x1e9   :  { %v405_v37 = vadd.f32 %v404_v36, %v403_v35  ;;  %585 = vmatpush.msrb.mxu3 %v578_v44 }
 0x1eb   :  { %v406_v38 = vrot.slane %v405_v37, 1  ;;  %586 = vmatpush.msrb.mxu3 %v577_v54 }
 0x1ed   :  { %v407_v39 = vadd.f32 %v406_v38, %v405_v37  ;;  %587 = vmatpush.msrb.mxu3 %v576_v57 }
 0x1ef   :  { %vm408_vm3 = vcmp.gt.f32.partialorder %v1729_v26, %v407_v39  ;;  %vm410_vm4 = vcmp.eq.f32.partialorder %v1729_v26, %v407_v39  ;;  %vm411_vm5 = vcmp.eq.f32.partialorder %v1727_v25, %v407_v39  ;;  %vm409_vm6 = vcmp.gt.f32.partialorder %v1727_v25, %v407_v39  ;;  %588 = vmatpush.msrb.mxu3 %v575_v59 }
 0x1f0   :  { %vm414_vm7 = vmand %vm410_vm4, %vm412_vm15  ;;  %v2024_v26 = vmov 1.0  }
 0x1f1   :  { %vm415_vm10 = vmand %vm411_vm5, %vm413_vm2  ;;  %589 = vmatpush.msrb.mxu3 %v574_v61 }
 0x1f2   :  { %vm416_vm11 = vmor %vm408_vm3, %vm414_vm7  ;;  %vm447_vm7 = vcmp.lt.s32.totalorder %v2204_v49, 16 }
 0x1f3   :  { %vm417_vm12 = vmor %vm409_vm6, %vm415_vm10  ;;  %v418_v46 = vsel %vm416_vm11, 1.0, %v2023_v22  ;;  %590 = vmatpush.msrb.mxu3 %v573_v12  ;;  %v448_v31 = vsel %vm447_vm7, 1.0, %v2023_v22 }
 0x1f4   :  { %v419_v47 = vsel %vm417_vm12, 1.0, %v2023_v22  ;;  %v420_v53 = vsel %vm219_vm0, %v418_v46, 0.0 }
 0x1f5   :  { %v421_v55 = vsel %vm219_vm0, %v419_v47, 0.0  ;;  %591 = vmatpush.msrb.mxu3 %v572_v13 }
 0x1f6   :  { %v422_v56 = vadd.f32 %v421_v55, %v420_v53  ;;  %v681_v53 = vld [vmem:[%s2624_s17] sm:$0x1] }
 0x1f7   :  { %592 = vmatpush.msrb.mxu3 %v571_v14  ;;  %v682_v54 = vmul.f32 %v681_v53, %v681_v53 }
 0x1f8   :  { %v423_v58 = vrot.slane %v422_v56, 4 }
 0x1f9   :  { %593 = vmatpush.msrb.mxu3 %v570_v15 }
 0x1fa   :  { %v424_v60 = vadd.f32 %v423_v58, %v422_v56  ;;  %v683_v56 = vsel %vm365_vm1, %v682_v54, 0.0 }
 0x1fb   :  { %594 = vmatpush.msrb.mxu3 %v569_v16 }
 0x1fc   :  { %v425_v62 = vrot.slane %v424_v60, 2 }
 0x1fd   :  { %595 = vmatpush.msrb.mxu3 %v568_v17  ;;  %v1712_v17 = vld [vmem:[%s2614_s7] ss:$0 sm:$0xff] }
 0x1fe   :  { %v426_v63 = vadd.f32 %v425_v62, %v424_v60 }
 0x1ff   :  { %596 = vmatpush.msrb.mxu3 %v567_v18 }
 0x200   :  { %v427_v1 = vrot.slane %v426_v63, 1 }
 0x201   :  { %597 = vmatpush.msrb.mxu3 %v566_v19 }
 0x202   :  { %v428_v2 = vadd.f32 %v427_v1, %v426_v63 }
 0x204   :  { %vm437_vm3 = vcmp.eq.f32.partialorder %v2284_v0, %v428_v2  ;;  %v430_v5 = vmul.f32 %v428_v2, %v2256_v23  ;;  %v429_v6 = vmul.f32 %v428_v2, %v2261_v24  ;;  %vm438_vm4 = vcmp.eq.f32.partialorder %v2295_v10, %v428_v2 }
 0x205   :  { %v439_v7 = vsel %vm437_vm3, 1.0, %v2023_v22  ;;  %v440_v11 = vsel %vm438_vm4, 1.0, %v2023_v22 }
 0x206   :  { %1634 = vmatmul.msk.f32.vlgmr.msra.gmra.mxu3 %vm219_vm0, %v439_v7  ;;  %1640 = vmatmul.msk.f32.vlgmr.msrb.gmra.mxu1 %vm219_vm0, %v439_v7  ;;  %v434_v8 = vsel %vm219_vm0, %v430_v5, 0.0  ;;  %v431_v9 = vsel %vm219_vm0, %v429_v6, 0.0 }
 0x207   :  { %435 = vadd.xlane.f32.xlu2 %v434_v8  ;;  %432 = vadd.xlane.f32.xlu0 %v431_v9 }
 0x20e   :  { %1635 = vmatmul.msk.f32.gmra.mxu3 %vm219_vm0, %v440_v11  ;;  %1641 = vmatmul.msk.f32.gmra.mxu1 %vm219_vm0, %v440_v11 }
 0x20f   :  { %684 = vadd.xlane.f32.xlu0 %v683_v56 }
 0x27a   :  { %v2304_v21 = vpop.xlane.xlu2 %435  ;;  %v2306_v25 = vpop.xlane.xlu0 %432 }
 0x27b   :  { %vm2627_vm5 = vcmp.eq.f32.partialorder %v2302_v20, %v2304_v21  ;;  %vm2628_vm6 = vcmp.eq.f32.partialorder %v2302_v20, %v2306_v25 }
 0x27c   :  { %1642 = vmatpush.msk.msrb.mxu2 %vm2627_vm5, %v2024_v26 }
 0x27e   :  { %1643 = vmatpush.msk.msrb.mxu2 %vm2628_vm6, %v2024_v26 }
 0x283   :  { %v499_v27 = vpop.f32.mrf.mxu1 }
 0x284   :  { %1644 = vmatmul.msk.f32.vlgmr.msrb.gmra.mxu2 %vm219_vm0, %v499_v27  ;;  %v1713_v27 = vld [vmem:[%s2624_s17] ss:$0 sm:$0xff] }
 0x289   :  { %v474_v28 = vpop.f32.mrf.mxu3 }
 0x28a   :  { %598 = vmatmul.f32.vlgmr.msrb.gmra.mxu3 %v474_v28 }
 0x28b   :  { %v502_v29 = vpop.f32.mrf.mxu1 }
 0x28c   :  { %1645 = vmatmul.msk.f32.gmra.mxu2 %vm219_vm0, %v502_v29 }
 0x291   :  { %v477_v30 = vpop.f32.mrf.mxu3 }
 0x292   :  { %601 = vmatmul.f32.gmra.mxu3 %v477_v30 }
 0x307   :  { %v528_v32 = vpop.f32.mrf.mxu2 }
 0x308   :  { %v2324_v33 = vmul.f32 %v528_v32, %v448_v31 }
 0x30a   :  { %v538_v34 = vsel %vm219_vm0, %v2324_v33, 0.0  ;;  %v648_v39 = vsel %vm2211_vm8, 1.0, %v2324_v33 }
 0x30b   :  { %539 = vadd.xlane.f32.xlu2 %v538_v34 }
 0x30d   :  { %v599_v59 = vpop.f32.mrf.mxu3 }
 0x30f   :  { %v531_v35 = vpop.f32.mrf.mxu2 }
 0x310   :  { %v2328_v36 = vmul.f32 %v531_v35, %v448_v31 }
 0x312   :  { %v649_v37 = vsel %vm2217_vm9, 1.0, %v2328_v36  ;;  %v541_v38 = vsel %vm219_vm0, %v2328_v36, 0.0 }
 0x313   :  { %670 = vmatpush.msra.mxu2 %v649_v37  ;;  %542 = vadd.xlane.f32.xlu1 %v541_v38 }
 0x315   :  { %671 = vmatpush.msra.mxu2 %v648_v39  ;;  %v602_v7 = vpop.f32.mrf.mxu3 }
 0x316   :  { %1648 = vmatmul.msk.f32.vlgmr.msra.gmra.mxu2 %vm219_vm0, %v648_v39  ;;  %v685_v39 = vpop.xlane.xlu0 %684 }
 0x31e   :  { %1649 = vmatmul.msk.f32.gmra.mxu2 %vm219_vm0, %v649_v37 }
 0x37e   :  { %v540_v40 = vpop.xlane.xlu2 %539 }
 0x37f   :  { %v544_v41 = vadd.f32 2.0, %v540_v40 }
 0x381   :  { %1730 = vrsqrt.f32 %v544_v41  ;;  %vm552_vm12 = vweird.f32 %v544_v41 }
 0x386   :  { %v543_v43 = vpop.xlane.xlu1 %542 }
 0x387   :  { %v1731_v44 = vpop.eup %1730  ;;  %v545_v46 = vadd.f32 2.0, %v543_v43 }
 0x388   :  { %v547_v47 = vmul.f32 %v1731_v44, %v544_v41  ;;  %vm553_vm10 = vweird.f32 %v1731_v44 }
 0x389   :  { %1732 = vrsqrt.f32 %v545_v46  ;;  %vm554_vm3 = vmor %vm552_vm12, %vm553_vm10  ;;  %vm562_vm4 = vweird.f32 %v545_v46  ;;  %vm692_vm10 = vweird.f32 %v685_v39 }
 0x38a   :  { %v548_v55 = vmul.f32 %v1731_v44, %v547_v47  ;;  %1734 = vrsqrt.f32 %v685_v39 }
 0x38c   :  { %v549_v57 = vmul.f32 0.5, %v548_v55 }
 0x38e   :  { %v550_v61 = vsub.f32 1.5, %v549_v57 }
 0x38f   :  { %v1733_v58 = vpop.eup %1732 }
 0x390   :  { %v557_v60 = vmul.f32 %v1733_v58, %v545_v46  ;;  %v551_v1 = vmul.f32 %v1731_v44, %v550_v61  ;;  %vm563_vm11 = vweird.f32 %v1733_v58  ;;  %v1735_v40 = vpop.eup %1734 }
 0x391   :  { %vm564_vm7 = vmor %vm562_vm4, %vm563_vm11  ;;  %v687_v41 = vmul.f32 %v1735_v40, %v685_v39  ;;  %vm693_vm11 = vweird.f32 %v1735_v40  ;;  %v890_v39 = vld [vmem:[#allocation10 + $0x48] sm:$0xff] }
 0x392   :  { %v558_v62 = vmul.f32 %v1733_v58, %v557_v60  ;;  %v2346_v9 = vsel %vm554_vm3, %v1731_v44, %v551_v1  ;;  %vm694_vm12 = vmor %vm692_vm10, %vm693_vm11 }
 0x393   :  { %v605_v12 = vmul.f32 %v599_v59, %v2346_v9  ;;  %v688_v43 = vmul.f32 %v1735_v40, %v687_v41  ;;  %v889_v41 = vld [vmem:[#allocation10 + $0x40] sm:$0xff] }
 0x394   :  { %v559_v63 = vmul.f32 0.5, %v558_v62 }
 0x395   :  { %v607_v14 = vmul.f32 2.0, %v605_v12  ;;  %v689_v44 = vmul.f32 0.5, %v688_v43 }
 0x396   :  { %v560_v2 = vsub.f32 1.5, %v559_v63 }
 0x397   :  { %v690_v46 = vsub.f32 1.5, %v689_v44  ;;  %v888_v44 = vld [vmem:[#allocation10 + $0x38] sm:$0xff] }
 0x398   :  { %v561_v5 = vmul.f32 %v1733_v58, %v560_v2 }
 0x399   :  { %v673_v6 = vpop.f32.mrf.mxu2  ;;  %v691_v47 = vmul.f32 %v1735_v40, %v690_v46 }
 0x39a   :  { %v2344_v8 = vsel %vm564_vm7, %v1733_v58, %v561_v5 }
 0x39b   :  { %v606_v11 = vmul.f32 %v602_v7, %v2344_v8  ;;  %v695_v53 = vsel %vm694_vm12, %v1735_v40, %v691_v47  ;;  %v887_v47 = vld [vmem:[#allocation10 + $0x30] sm:$0xff] }
 0x39c   :  { %v705_v55 = vperm.slane %v695_v53, 0 }
 0x39d   :  { %629 = vmatpush.msra.mxu1 %v606_v11  ;;  %v608_v29 = vmul.f32 2.0, %v606_v11 }
 0x39f   :  { %630 = vmatpush.msra.mxu1 %v605_v12 }
 0x3a0   :  { %1646 = vmatmul.msk.f32.vlgmr.msra.gmra.mxu1 %vm219_vm0, %v2324_v33 }
 0x3a1   :  { %v676_v13 = vpop.f32.mrf.mxu2 }
 0x3a2   :  { %1653 = vmatpush.msk.msrb.mxu1 %vm1636_vm13, %v676_v13 }
 0x3a4   :  { %1655 = vmatpush.msk.msrb.mxu1 %vm1638_vm14, %v673_v6 }
 0x3a8   :  { %1647 = vmatmul.msk.f32.gmra.mxu1 %vm219_vm0, %v2328_v36 }
 0x41d   :  { %v632_v15 = vpop.f32.mrf.mxu1 }
 0x41e   :  { %v633_v16 = vadd.f32 %v632_v15, %v607_v14 }
 0x420   :  { %v638_v18 = vmul.f32 %v633_v16, %v2346_v9  ;;  %v896_v16 = vld [vmem:[#allocation10 + $0x78] sm:$0xff] }
 0x421   :  { %897 = vmatpush.msra.mxu3 %v896_v16 }
 0x422   :  { %v644_v19 = vadd.f32 %v1712_v17, %v638_v18  ;;  %v894_v18 = vld [vmem:[#allocation10 + $0x68] sm:$0xff] }
 0x424   :  { %v2367_v28 = vmax.f32 %v644_v19, 0.0  ;;  %v893_v19 = vld [vmem:[#allocation10 + $0x60] sm:$0xff] }
 0x425   :  { %v635_v30 = vpop.f32.mrf.mxu1 }
 0x426   :  { %v636_v31 = vadd.f32 %v635_v30, %v608_v29  ;;  %v699_v32 = vmul.f32 %v1713_v27, %v2367_v28 }
 0x428   :  { %v639_v34 = vmul.f32 %v636_v31, %v2344_v8  ;;  %701 = vadd.xlane.f32.xlu1 %v699_v32  ;;  %v892_v31 = vld [vmem:[#allocation10 + $0x58] sm:$0xff] }
 0x42a   :  { %v645_v35 = vadd.f32 %v1712_v17, %v639_v34  ;;  %v895_v17 = vld [vmem:[#allocation10 + $0x70] sm:$0xff] }
 0x42b   :  { %898 = vmatpush.msra.mxu3 %v895_v17 }
 0x42c   :  { %v2371_v37 = vmax.f32 %v645_v35, 0.0  ;;  %v891_v35 = vld [vmem:[#allocation10 + $0x50] sm:$0xff] }
 0x42d   :  { %899 = vmatpush.msra.mxu3 %v894_v18 }
 0x42e   :  { %v700_v38 = vmul.f32 %v1713_v27, %v2371_v37 }
 0x42f   :  { %900 = vmatpush.msra.mxu3 %v893_v19 }
 0x430   :  { %703 = vadd.xlane.f32.xlu2 %v700_v38 }
 0x431   :  { %901 = vmatpush.msra.mxu3 %v892_v31 }
 0x433   :  { %902 = vmatpush.msra.mxu3 %v891_v35 }
 0x435   :  { %903 = vmatpush.msra.mxu3 %v890_v39 }
 0x437   :  { %904 = vmatpush.msra.mxu3 %v889_v41 }
 0x439   :  { %905 = vmatpush.msra.mxu3 %v888_v44  ;;  %v996_v44 = vld [vmem:[%s2625_s18] sm:$0x1] }
 0x43b   :  { %906 = vmatpush.msra.mxu3 %v887_v47 }
 0x49b   :  { %v702_v54 = vpop.xlane.xlu1 %701 }
 0x49c   :  { %v706_v56 = vmul.f32 %v705_v55, %v702_v54  ;;  %v886_v54 = vld [vmem:[#allocation10 + $0x28] sm:$0xff] }
 0x49d   :  { %907 = vmatpush.msra.mxu3 %v886_v54 }
 0x49e   :  { %1736 = vtanh.f32 %v706_v56 }
 0x4a3   :  { %v704_v57 = vpop.xlane.xlu2 %703 }
 0x4a4   :  { %v707_v58 = vmul.f32 %v705_v55, %v704_v57  ;;  %v1737_v59 = vpop.eup %1736 }
 0x4a5   :  { %v712_v60 = vmul.f32 %v1737_v59, %v2261_v24  ;;  %v764_v5 = vmul.f32 %v1737_v59, %v2367_v28 }
 0x4a6   :  { %1738 = vtanh.f32 %v707_v58 }
 0x4a7   :  { %v714_v1 = vsel %vm219_vm0, %v712_v60, 0.0 }
 0x4ac   :  { %v1739_v61 = vpop.eup %1738 }
 0x4ad   :  { %v713_v62 = vmul.f32 %v1739_v61, %v2256_v23  ;;  %v765_v63 = vmul.f32 %v1739_v61, %v2371_v37 }
 0x4af   :  { %v715_v2 = vsel %vm219_vm0, %v713_v62, 0.0  ;;  %786 = vmatpush.msra.mxu0 %v765_v63  ;;  %v885_v62 = vld [vmem:[#allocation10 + $0x20] sm:$0xff]  ;;  %v884_v63 = vld [vmem:[#allocation10 + $0x18] sm:$0xff] }
 0x4b0   :  { %v716_v6 = vadd.f32 %v715_v2, %v714_v1  ;;  %908 = vmatpush.msra.mxu3 %v885_v62  ;;  %v883_v1 = vld [vmem:[#allocation10 + $0x10] sm:$0xff]  ;;  %v882_v2 = vld [vmem:[#allocation10 + $0x8] sm:$0xff] }
 0x4b1   :  { %787 = vmatpush.msra.mxu0 %v764_v5  ;;  %v881_v5 = vld [vmem:[#allocation10] sm:$0xff] }
 0x4b2   :  { %v717_v7 = vrot.slane %v716_v6, 4  ;;  %909 = vmatpush.msra.mxu3 %v884_v63 }
 0x4b4   :  { %v718_v11 = vadd.f32 %v717_v7, %v716_v6  ;;  %910 = vmatpush.msra.mxu3 %v883_v1 }
 0x4b6   :  { %v719_v12 = vrot.slane %v718_v11, 2  ;;  %911 = vmatpush.msra.mxu3 %v882_v2 }
 0x4b8   :  { %v720_v13 = vadd.f32 %v719_v12, %v718_v11  ;;  %912 = vmatpush.msra.mxu3 %v881_v5 }
 0x4ba   :  { %v721_v14 = vrot.slane %v720_v13, 1 }
 0x4bc   :  { %v722_v15 = vadd.f32 %v721_v14, %v720_v13 }
 0x4be   :  { %vm723_vm3 = vcmp.gt.f32.partialorder %v1737_v59, %v722_v15  ;;  %vm725_vm4 = vcmp.eq.f32.partialorder %v1737_v59, %v722_v15  ;;  %vm726_vm7 = vcmp.eq.f32.partialorder %v1739_v61, %v722_v15  ;;  %vm724_vm10 = vcmp.gt.f32.partialorder %v1739_v61, %v722_v15 }
 0x4bf   :  { %vm727_vm11 = vmand %vm725_vm4, %vm412_vm15 }
 0x4c0   :  { %vm728_vm12 = vmand %vm726_vm7, %vm413_vm2  ;;  %vm762_vm7 = vcmp.lt.s32.totalorder %v2204_v49, 8 }
 0x4c1   :  { %vm729_vm5 = vmor %vm723_vm3, %vm727_vm11  ;;  %v763_v16 = vsel %vm762_vm7, 1.0, %v2023_v22 }
 0x4c2   :  { %vm730_vm6 = vmor %vm724_vm10, %vm728_vm12  ;;  %v731_v27 = vsel %vm729_vm5, 1.0, %v2023_v22 }
 0x4c3   :  { %v732_v29 = vsel %vm730_vm6, 1.0, %v2023_v22  ;;  %v733_v30 = vsel %vm219_vm0, %v731_v27, 0.0 }
 0x4c4   :  { %v734_v32 = vsel %vm219_vm0, %v732_v29, 0.0 }
 0x4c5   :  { %v735_v34 = vadd.f32 %v734_v32, %v733_v30 }
 0x4c7   :  { %v736_v38 = vrot.slane %v735_v34, 4 }
 0x4c9   :  { %v737_v40 = vadd.f32 %v736_v38, %v735_v34 }
 0x4cb   :  { %v738_v43 = vrot.slane %v737_v40, 2 }
 0x4cd   :  { %v739_v46 = vadd.f32 %v738_v43, %v737_v40 }
 0x4cf   :  { %v740_v53 = vrot.slane %v739_v46, 1 }
 0x4d1   :  { %v741_v55 = vadd.f32 %v740_v53, %v739_v46  ;;  %v997_v46 = vmul.f32 %v996_v44, %v996_v44 }
 0x4d3   :  { %vm750_vm5 = vcmp.eq.f32.partialorder %v2284_v0, %v741_v55  ;;  %v743_v56 = vmul.f32 %v741_v55, %v2256_v23  ;;  %v742_v57 = vmul.f32 %v741_v55, %v2261_v24  ;;  %vm751_vm6 = vcmp.eq.f32.partialorder %v2295_v10, %v741_v55 }
 0x4d4   :  { %v752_v58 = vsel %vm750_vm5, 1.0, %v2023_v22  ;;  %v753_v61 = vsel %vm751_vm6, 1.0, %v2023_v22  ;;  %v998_v53 = vsel %vm365_vm1, %v997_v46, 0.0 }
 0x4d5   :  { %1650 = vmatmul.msk.f32.vlgmr.msra.gmra.mxu0 %vm219_vm0, %v752_v58  ;;  %1656 = vmatmul.msk.f32.vlgmr.msrb.gmra.mxu1 %vm219_vm0, %v752_v58  ;;  %v747_v59 = vsel %vm219_vm0, %v743_v56, 0.0  ;;  %v744_v60 = vsel %vm219_vm0, %v742_v57, 0.0 }
 0x4d6   :  { %748 = vadd.xlane.f32.xlu0 %v747_v59  ;;  %745 = vadd.xlane.f32.xlu1 %v744_v60 }
 0x4dd   :  { %1651 = vmatmul.msk.f32.gmra.mxu0 %vm219_vm0, %v753_v61  ;;  %1657 = vmatmul.msk.f32.gmra.mxu1 %vm219_vm0, %v753_v61 }
 0x4de   :  { %999 = vadd.xlane.f32.xlu1 %v998_v53 }
 0x549   :  { %v2402_v6 = vpop.xlane.xlu0 %748  ;;  %v2404_v7 = vpop.xlane.xlu1 %745 }
 0x54a   :  { %vm755_vm3 = vcmp.eq.f32.partialorder %v2302_v20, %v2402_v6  ;;  %vm754_vm4 = vcmp.eq.f32.partialorder %v2302_v20, %v2404_v7 }
 0x54b   :  { %1658 = vmatpush.msk.msrb.mxu2 %vm755_vm3, %v2024_v26 }
 0x54d   :  { %1659 = vmatpush.msk.msrb.mxu2 %vm754_vm4, %v2024_v26 }
 0x552   :  { %v789_v11 = vpop.f32.mrf.mxu0  ;;  %v814_v12 = vpop.f32.mrf.mxu1 }
 0x553   :  { %1660 = vmatmul.msk.f32.vlgmr.msrb.gmra.mxu2 %vm219_vm0, %v814_v12  ;;  %913 = vmatmul.f32.vlgmr.msra.gmra.mxu3 %v789_v11 }
 0x55a   :  { %v792_v13 = vpop.f32.mrf.mxu0  ;;  %v817_v14 = vpop.f32.mrf.mxu1 }
 0x55b   :  { %v796_v15 = vmul.f32 0.0, %v792_v13  ;;  %1661 = vmatmul.msk.f32.gmra.mxu2 %vm219_vm0, %v817_v14 }
 0x55d   :  { %916 = vmatmul.f32.gmra.mxu3 %v796_v15 }
 0x5d6   :  { %v843_v17 = vpop.f32.mrf.mxu2  ;;  %v914_v57 = vpop.f32.mrf.mxu3 }
 0x5d7   :  { %v2422_v18 = vmul.f32 %v843_v17, %v763_v16 }
 0x5d9   :  { %v853_v19 = vsel %vm219_vm0, %v2422_v18, 0.0  ;;  %v963_v34 = vsel %vm2211_vm8, 1.0, %v2422_v18 }
 0x5da   :  { %854 = vadd.xlane.f32.xlu0 %v853_v19  ;;  %v1714_v19 = vld [vmem:[%s2615_s8] ss:$0 sm:$0xff] }
 0x5de   :  { %v846_v27 = vpop.f32.mrf.mxu2 }
 0x5df   :  { %v850_v29 = vmul.f32 0.0, %v846_v27 }
 0x5e0   :  { %v917_v2 = vpop.f32.mrf.mxu3 }
 0x5e1   :  { %v2426_v30 = vmul.f32 %v850_v29, %v763_v16 }
 0x5e3   :  { %v964_v31 = vsel %vm2217_vm9, 1.0, %v2426_v30  ;;  %v856_v32 = vsel %vm219_vm0, %v2426_v30, 0.0 }
 0x5e4   :  { %985 = vmatpush.msra.mxu1 %v964_v31  ;;  %857 = vadd.xlane.f32.xlu2 %v856_v32 }
 0x5e6   :  { %986 = vmatpush.msra.mxu1 %v963_v34 }
 0x5e7   :  { %1664 = vmatmul.msk.f32.vlgmr.msra.gmra.mxu1 %vm219_vm0, %v963_v34 }
 0x5ef   :  { %1665 = vmatmul.msk.f32.gmra.mxu1 %vm219_vm0, %v964_v31 }
 0x64d   :  { %v855_v35 = vpop.xlane.xlu0 %854 }
 0x64e   :  { %v859_v38 = vadd.f32 2.0, %v855_v35 }
 0x650   :  { %1740 = vrsqrt.f32 %v859_v38  ;;  %vm867_vm12 = vweird.f32 %v859_v38 }
 0x656   :  { %v1741_v39 = vpop.eup %1740 }
 0x657   :  { %v862_v40 = vmul.f32 %v1741_v39, %v859_v38  ;;  %v858_v41 = vpop.xlane.xlu2 %857  ;;  %vm868_vm10 = vweird.f32 %v1741_v39 }
 0x658   :  { %v860_v43 = vadd.f32 2.0, %v858_v41  ;;  %vm869_vm5 = vmor %vm867_vm12, %vm868_vm10 }
 0x659   :  { %v863_v47 = vmul.f32 %v1741_v39, %v862_v40 }
 0x65a   :  { %1742 = vrsqrt.f32 %v860_v43  ;;  %vm877_vm6 = vweird.f32 %v860_v43 }
 0x65b   :  { %v864_v54 = vmul.f32 0.5, %v863_v47 }
 0x65d   :  { %v865_v58 = vsub.f32 1.5, %v864_v54 }
 0x65f   :  { %v866_v61 = vmul.f32 %v1741_v39, %v865_v58 }
 0x660   :  { %v1743_v55 = vpop.eup %1742 }
 0x661   :  { %v872_v56 = vmul.f32 %v1743_v55, %v860_v43  ;;  %vm878_vm11 = vweird.f32 %v1743_v55  ;;  %v2444_v11 = vsel %vm869_vm5, %v1741_v39, %v866_v61  ;;  %v1000_v43 = vpop.xlane.xlu1 %999 }
 0x662   :  { %vm879_vm7 = vmor %vm877_vm6, %vm878_vm11  ;;  %v920_v13 = vmul.f32 %v914_v57, %v2444_v11  ;;  %1744 = vrsqrt.f32 %v1000_v43  ;;  %vm1007_vm1 = vweird.f32 %v1000_v43 }
 0x663   :  { %v873_v59 = vmul.f32 %v1743_v55, %v872_v56 }
 0x664   :  { %v988_v63 = vpop.f32.mrf.mxu1  ;;  %v922_v15 = vmul.f32 2.0, %v920_v13 }
 0x665   :  { %v874_v60 = vmul.f32 0.5, %v873_v59 }
 0x667   :  { %v875_v62 = vsub.f32 1.5, %v874_v60  ;;  %v1028_v60 = vmul.f32 -1e+30, %v2256_v23 }
 0x668   :  { %v1745_v44 = vpop.eup %1744 }
 0x669   :  { %v876_v1 = vmul.f32 %v1743_v55, %v875_v62  ;;  %v1002_v46 = vmul.f32 %v1745_v44, %v1000_v43  ;;  %vm1008_vm8 = vweird.f32 %v1745_v44 }
 0x66a   :  { %vm1009_vm9 = vmor %vm1007_vm1, %vm1008_vm8 }
 0x66b   :  { %v2442_v5 = vsel %vm879_vm7, %v1743_v55, %v876_v1  ;;  %v1003_v47 = vmul.f32 %v1745_v44, %v1002_v46  ;;  %v1030_v1 = vsel %vm219_vm0, %v1028_v60, 0.0 }
 0x66c   :  { %v921_v12 = vmul.f32 %v917_v2, %v2442_v5  ;;  %v991_v14 = vpop.f32.mrf.mxu1 }
 0x66d   :  { %v1004_v53 = vmul.f32 0.5, %v1003_v47 }
 0x66e   :  { %944 = vmatpush.msrb.mxu0 %v921_v12  ;;  %v923_v31 = vmul.f32 2.0, %v921_v12 }
 0x66f   :  { %v1005_v54 = vsub.f32 1.5, %v1004_v53  ;;  %v1206_v53 = vld [vmem:[#allocation11 + $0x50] sm:$0xff] }
 0x670   :  { %945 = vmatpush.msrb.mxu0 %v920_v13 }
 0x671   :  { %1662 = vmatmul.msk.f32.vlgmr.msrb.gmra.mxu0 %vm219_vm0, %v2422_v18  ;;  %v1006_v55 = vmul.f32 %v1745_v44, %v1005_v54  ;;  %v1205_v54 = vld [vmem:[#allocation11 + $0x48] sm:$0xff] }
 0x672   :  { %1671 = vmatpush.msk.msra.mxu0 %vm1636_vm13, %v991_v14 }
 0x673   :  { %v1010_v56 = vsel %vm1009_vm9, %v1745_v44, %v1006_v55  ;;  %v1207_v44 = vld [vmem:[#allocation11 + $0x58] sm:$0xff]  ;;  %vm1073_vm9 = vcmp.lt.s32.totalorder %v2202_v48, 4 }
 0x674   :  { %1673 = vmatpush.msk.msra.mxu0 %vm1638_vm14, %v988_v63  ;;  %v1020_v57 = vperm.slane %v1010_v56, 0 }
 0x679   :  { %1663 = vmatmul.msk.f32.gmra.mxu0 %vm219_vm0, %v2426_v30 }
 0x6ee   :  { %v947_v16 = vpop.f32.mrf.mxu0 }
 0x6ef   :  { %v948_v17 = vadd.f32 %v947_v16, %v922_v15 }
 0x6f1   :  { %v953_v27 = vmul.f32 %v948_v17, %v2444_v11 }
 0x6f3   :  { %v959_v29 = vadd.f32 %v1714_v19, %v953_v27 }
 0x6f5   :  { %v2465_v51 = vmax.f32 %v959_v29, 0.0 }
 0x6f6   :  { %v950_v32 = vpop.f32.mrf.mxu0 }
 0x6f7   :  { %v951_v34 = vadd.f32 %v950_v32, %v923_v31  ;;  %v1014_v35 = vmul.f32 %v1715_v52, %v2465_v51  ;;  %v1211_v32 = vld [vmem:[#allocation11 + $0x78] sm:$0xff] }
 0x6f9   :  { %v954_v38 = vmul.f32 %v951_v34, %v2442_v5  ;;  %1016 = vadd.xlane.f32.xlu2 %v1014_v35  ;;  %v1210_v34 = vld [vmem:[#allocation11 + $0x70] sm:$0xff]  ;;  %v1209_v35 = vld [vmem:[#allocation11 + $0x68] sm:$0xff] }
 0x6fb   :  { %v960_v39 = vadd.f32 %v1714_v19, %v954_v38  ;;  %v1208_v38 = vld [vmem:[#allocation11 + $0x60] sm:$0xff] }
 0x6fd   :  { %v2469_v40 = vmax.f32 %v960_v39, 0.0 }
 0x6ff   :  { %v1015_v41 = vmul.f32 %v1715_v52, %v2469_v40 }
 0x701   :  { %1018 = vadd.xlane.f32.xlu0 %v1015_v41 }
 0x76c   :  { %v1017_v58 = vpop.xlane.xlu2 %1016 }
 0x76d   :  { %v1021_v59 = vmul.f32 %v1020_v57, %v1017_v58 }
 0x76f   :  { %1746 = vtanh.f32 %v1021_v59 }
 0x774   :  { %v1019_v61 = vpop.xlane.xlu0 %1018 }
 0x775   :  { %v1747_v62 = vpop.eup %1746  ;;  %v1022_v63 = vmul.f32 %v1020_v57, %v1019_v61 }
 0x776   :  { %v1027_v2 = vmul.f32 %v1747_v62, %v2261_v24  ;;  %v1079_v27 = vmul.f32 %v1747_v62, %v2465_v51 }
 0x777   :  { %1748 = vtanh.f32 %v1022_v63 }
 0x778   :  { %v1029_v12 = vsel %vm219_vm0, %v1027_v2, 0.0  ;;  %v1202_v2 = vld [vmem:[#allocation11 + $0x30] sm:$0xff] }
 0x779   :  { %v1031_v13 = vadd.f32 %v1030_v1, %v1029_v12  ;;  %v1201_v12 = vld [vmem:[#allocation11 + $0x28] sm:$0xff] }
 0x77b   :  { %v1032_v14 = vrot.slane %v1031_v13, 4 }
 0x77d   :  { %v1749_v15 = vpop.eup %1748  ;;  %v1033_v16 = vadd.f32 %v1032_v14, %v1031_v13  ;;  %v1200_v13 = vld [vmem:[#allocation11 + $0x20] sm:$0xff]  ;;  %v1199_v14 = vld [vmem:[#allocation11 + $0x18] sm:$0xff] }
 0x77e   :  { %v1080_v17 = vmul.f32 %v1749_v15, %v2469_v40  ;;  %v1198_v15 = vld [vmem:[#allocation11 + $0x10] sm:$0xff] }
 0x77f   :  { %v1034_v19 = vrot.slane %v1033_v16, 2 }
 0x780   :  { %1101 = vmatpush.msra.mxu2 %v1080_v17 }
 0x781   :  { %v1035_v29 = vadd.f32 %v1034_v19, %v1033_v16  ;;  %v1196_v16 = vld [vmem:[#allocation11] sm:$0xff] }
 0x782   :  { %1102 = vmatpush.msra.mxu2 %v1079_v27 }
 0x783   :  { %v1036_v52 = vrot.slane %v1035_v29, 1 }
 0x784   :  { %1212 = vmatpush.msrb.mxu2 %v1211_v32 }
 0x785   :  { %v1037_v31 = vadd.f32 %v1036_v52, %v1035_v29  ;;  %v2519_v29 = vsel %vm1073_vm9, 1.0, %v2023_v22 }
 0x786   :  { %1213 = vmatpush.msrb.mxu2 %v1210_v34 }
 0x787   :  { %vm1038_vm13 = vcmp.gt.f32.partialorder %v1747_v62, %v1037_v31  ;;  %vm1040_vm14 = vcmp.eq.f32.partialorder %v1747_v62, %v1037_v31  ;;  %vm1667_vm10 = vcmp.eq.f32.partialorder %v1037_v31, -1e+30  ;;  %vm1666_vm11 = vcmp.lt.f32.partialorder %v1037_v31, -1e+30 }
 0x788   :  { %vm1042_vm12 = vmand %vm1040_vm14, %vm412_vm15  ;;  %1214 = vmatpush.msrb.mxu2 %v1209_v35 }
 0x789   :  { %vm1043_vm5 = vmand %vm1667_vm10, %vm413_vm2 }
 0x78a   :  { %vm1044_vm6 = vmor %vm1038_vm13, %vm1042_vm12  ;;  %1215 = vmatpush.msrb.mxu2 %v1208_v38  ;;  %vm1077_vm13 = vcmp.lt.s32.totalorder %v2204_v49, 4 }
 0x78b   :  { %vm1045_vm7 = vmor %vm1666_vm11, %vm1043_vm5  ;;  %v1046_v39 = vsel %vm1044_vm6, 1.0, %v2023_v22  ;;  %v1078_v38 = vsel %vm1077_vm13, 1.0, %v2023_v22 }
 0x78c   :  { %v1047_v41 = vsel %vm1045_vm7, 1.0, %v2023_v22  ;;  %v1048_v43 = vsel %vm219_vm0, %v1046_v39, 0.0  ;;  %1216 = vmatpush.msrb.mxu2 %v1207_v44 }
 0x78d   :  { %v1049_v46 = vsel %vm219_vm0, %v1047_v41, 0.0 }
 0x78e   :  { %v1050_v47 = vadd.f32 %v1049_v46, %v1048_v43  ;;  %1217 = vmatpush.msrb.mxu2 %v1206_v53 }
 0x790   :  { %v1051_v50 = vrot.slane %v1050_v47, 4  ;;  %1218 = vmatpush.msrb.mxu2 %v1205_v54 }
 0x792   :  { %v1052_v55 = vadd.f32 %v1051_v50, %v1050_v47 }
 0x794   :  { %v1053_v56 = vrot.slane %v1052_v55, 2 }
 0x796   :  { %v1054_v57 = vadd.f32 %v1053_v56, %v1052_v55 }
 0x798   :  { %v1055_v58 = vrot.slane %v1054_v57, 1 }
 0x79a   :  { %v1056_v59 = vadd.f32 %v1055_v58, %v1054_v57 }
 0x79c   :  { %vm1065_vm15 = vcmp.eq.f32.partialorder %v2284_v0, %v1056_v59  ;;  %v1058_v60 = vmul.f32 %v1056_v59, %v2256_v23  ;;  %v1057_v61 = vmul.f32 %v1056_v59, %v2261_v24  ;;  %vm1066_vm2 = vcmp.eq.f32.partialorder %v2295_v10, %v1056_v59  ;;  %v1204_v23 = vld [vmem:[#allocation11 + $0x40] sm:$0xff]  ;;  %v1203_v24 = vld [vmem:[#allocation11 + $0x38] sm:$0xff]  ;;  %v1197_v10 = vld [vmem:[#allocation11 + $0x8] sm:$0xff] }
 0x79d   :  { %v1067_v62 = vsel %vm1065_vm15, 1.0, %v2023_v22  ;;  %v1068_v0 = vsel %vm1066_vm2, 1.0, %v2023_v22  ;;  %1219 = vmatpush.msrb.mxu2 %v1204_v23 }
 0x79e   :  { %1668 = vmatmul.msk.f32.vlgmr.msra.gmra.mxu2 %vm219_vm0, %v1067_v62  ;;  %1674 = vmatmul.msk.f32.vlgmr.msra.gmra.mxu0 %vm219_vm0, %v1067_v62  ;;  %v1062_v63 = vsel %vm219_vm0, %v1058_v60, 0.0  ;;  %v1059_v1 = vsel %vm219_vm0, %v1057_v61, 0.0 }
 0x79f   :  { %1063 = vadd.xlane.f32.xlu1 %v1062_v63  ;;  %1060 = vadd.xlane.f32.xlu2 %v1059_v1 }
 0x7a0   :  { %1220 = vmatpush.msrb.mxu2 %v1203_v24 }
 0x7a2   :  { %1221 = vmatpush.msrb.mxu2 %v1202_v2 }
 0x7a4   :  { %1222 = vmatpush.msrb.mxu2 %v1201_v12 }
 0x7a6   :  { %1669 = vmatmul.msk.f32.gmra.mxu2 %vm219_vm0, %v1068_v0  ;;  %1675 = vmatmul.msk.f32.gmra.mxu0 %vm219_vm0, %v1068_v0 }
 0x7a7   :  { %1223 = vmatpush.msrb.mxu2 %v1200_v13 }
 0x7a9   :  { %1224 = vmatpush.msrb.mxu2 %v1199_v14 }
 0x7ab   :  { %1225 = vmatpush.msrb.mxu2 %v1198_v15 }
 0x7ad   :  { %1226 = vmatpush.msrb.mxu2 %v1197_v10  ;;  %v1326_v10 = vld [vmem:[#allocation13 + $0x78] sm:$0xff] }
 0x7af   :  { %1227 = vmatpush.msrb.mxu2 %v1196_v16  ;;  %v1325_v16 = vld [vmem:[#allocation13 + $0x70] sm:$0xff] }
 0x812   :  { %v2500_v17 = vpop.xlane.xlu1 %1063  ;;  %v2502_v19 = vpop.xlane.xlu2 %1060 }
 0x813   :  { %vm1070_vm1 = vcmp.eq.f32.partialorder %v2302_v20, %v2500_v17  ;;  %vm1069_vm8 = vcmp.eq.f32.partialorder %v2302_v20, %v2502_v19 }
 0x814   :  { %1676 = vmatpush.msk.msrb.mxu1 %vm1070_vm1, %v2024_v26 }
 0x816   :  { %1677 = vmatpush.msk.msrb.mxu1 %vm1069_vm8, %v2024_v26 }
 0x818   :  { %1327 = vmatpush.msra.mxu1 %v1326_v10 }
 0x81a   :  { %1328 = vmatpush.msra.mxu1 %v1325_v16  ;;  %v1432_v16 = vld [vmem:[#allocation14 + $0x60] sm:$0xff] }
 0x81b   :  { %v1129_v27 = vpop.f32.mrf.mxu0 }
 0x81c   :  { %1678 = vmatmul.msk.f32.vlgmr.msrb.gmra.mxu1 %vm219_vm0, %v1129_v27 }
 0x821   :  { %v1104_v52 = vpop.f32.mrf.mxu2 }
 0x822   :  { %v1110_v31 = vmul.f32 %v1104_v52, %v2519_v29  ;;  %v1324_v52 = vld [vmem:[#allocation13 + $0x68] sm:$0xff] }
 0x823   :  { %v1132_v32 = vpop.f32.mrf.mxu0  ;;  %1329 = vmatpush.msra.mxu1 %v1324_v52 }
 0x824   :  { %1679 = vmatmul.msk.f32.gmra.mxu1 %vm219_vm0, %v1132_v32  ;;  %1228 = vmatmul.f32.vlgmr.msrb.gmra.mxu2 %v1110_v31  ;;  %v1323_v32 = vld [vmem:[#allocation13 + $0x60] sm:$0xff] }
 0x825   :  { %1330 = vmatpush.msra.mxu1 %v1323_v32 }
 0x829   :  { %v1107_v34 = vpop.f32.mrf.mxu2 }
 0x82a   :  { %v1111_v35 = vmul.f32 0.0, %v1107_v34 }
 0x82c   :  { %1231 = vmatmul.f32.gmra.mxu2 %v1111_v35  ;;  %v1322_v35 = vld [vmem:[#allocation13 + $0x58] sm:$0xff] }
 0x82d   :  { %1331 = vmatpush.msra.mxu1 %v1322_v35 }
 0x899   :  { %v1158_v26 = vpop.f32.mrf.mxu1 }
 0x89a   :  { %v1164_v48 = vmul.f32 %v1158_v26, %v2519_v29  ;;  %v1321_v26 = vld [vmem:[#allocation13 + $0x50] sm:$0xff] }
 0x89b   :  { %1332 = vmatpush.msra.mxu1 %v1321_v26 }
 0x89c   :  { %v1166_v39 = vmul.f32 %v1164_v48, %v1078_v38  ;;  %v1716_v48 = vld [vmem:[%s2616_s9] ss:$0 sm:$0xff] }
 0x89e   :  { %v1168_v41 = vsel %vm219_vm0, %v1166_v39, 0.0 }
 0x89f   :  { %1169 = vadd.xlane.f32.xlu1 %v1168_v41 }
 0x8a1   :  { %v1161_v43 = vpop.f32.mrf.mxu1 }
 0x8a2   :  { %v1165_v44 = vmul.f32 0.0, %v1161_v43  ;;  %v1320_v43 = vld [vmem:[#allocation13 + $0x48] sm:$0xff] }
 0x8a3   :  { %1333 = vmatpush.msra.mxu1 %v1320_v43 }
 0x8a4   :  { %v1167_v46 = vmul.f32 %v1165_v44, %v1078_v38 }
 0x8a6   :  { %v1171_v47 = vsel %vm219_vm0, %v1167_v46, 0.0 }
 0x8a7   :  { %1172 = vadd.xlane.f32.xlu0 %v1171_v47  ;;  %v1229_v60 = vpop.f32.mrf.mxu2 }
 0x8af   :  { %v1232_v2 = vpop.f32.mrf.mxu2 }
 0x912   :  { %v1170_v53 = vpop.xlane.xlu1 %1169 }
 0x913   :  { %v1174_v50 = vadd.f32 2.0, %v1170_v53 }
 0x915   :  { %1750 = vrsqrt.f32 %v1174_v50  ;;  %vm1182_vm11 = vweird.f32 %v1174_v50 }
 0x91a   :  { %v1173_v54 = vpop.xlane.xlu0 %1172 }
 0x91b   :  { %v1751_v49 = vpop.eup %1750  ;;  %v1175_v55 = vadd.f32 2.0, %v1173_v54 }
 0x91c   :  { %v1177_v56 = vmul.f32 %v1751_v49, %v1174_v50  ;;  %vm1183_vm14 = vweird.f32 %v1751_v49  ;;  %v1318_v50 = vld [vmem:[#allocation13 + $0x38] sm:$0xff] }
 0x91d   :  { %1752 = vrsqrt.f32 %v1175_v55  ;;  %vm1184_vm12 = vmor %vm1182_vm11, %vm1183_vm14  ;;  %vm1192_vm5 = vweird.f32 %v1175_v55 }
 0x91e   :  { %v1178_v57 = vmul.f32 %v1751_v49, %v1177_v56 }
 0x920   :  { %v1179_v58 = vmul.f32 0.5, %v1178_v57  ;;  %v1316_v57 = vld [vmem:[#allocation13 + $0x28] sm:$0xff] }
 0x922   :  { %v1180_v62 = vsub.f32 1.5, %v1179_v58 }
 0x923   :  { %v1753_v59 = vpop.eup %1752 }
 0x924   :  { %v1187_v61 = vmul.f32 %v1753_v59, %v1175_v55  ;;  %v1181_v0 = vmul.f32 %v1751_v49, %v1180_v62  ;;  %vm1193_vm10 = vweird.f32 %v1753_v59  ;;  %v1071_v62 = vsel %vm1069_vm8, 1.0, %v2023_v22 }
 0x925   :  { %vm1194_vm6 = vmor %vm1192_vm5, %vm1193_vm10 }
 0x926   :  { %v1188_v63 = vmul.f32 %v1753_v59, %v1187_v61  ;;  %v1185_v13 = vsel %vm1184_vm12, %v1751_v49, %v1181_v0  ;;  %v1317_v49 = vld [vmem:[#allocation13 + $0x30] sm:$0xff]  ;;  %v1314_v61 = vld [vmem:[#allocation13 + $0x18] sm:$0xff]  ;;  %v1311_v0 = vld [vmem:[#allocation13] sm:$0xff] }
 0x927   :  { %v1235_v15 = vmul.f32 %v1229_v60, %v1185_v13 }
 0x928   :  { %v1189_v1 = vmul.f32 0.5, %v1188_v63  ;;  %v1313_v63 = vld [vmem:[#allocation13 + $0x10] sm:$0xff] }
 0x929   :  { %v1237_v31 = vmul.f32 2.0, %v1235_v15 }
 0x92a   :  { %v1190_v23 = vsub.f32 1.5, %v1189_v1  ;;  %v1072_v1 = vsel %vm1070_vm1, 1.0, %v2023_v22 }
 0x92c   :  { %v1191_v24 = vmul.f32 %v1753_v59, %v1190_v23 }
 0x92e   :  { %v1195_v12 = vsel %vm1194_vm6, %v1753_v59, %v1191_v24  ;;  %v1315_v59 = vld [vmem:[#allocation13 + $0x20] sm:$0xff] }
 0x92f   :  { %v1236_v14 = vmul.f32 %v1232_v2, %v1195_v12 }
 0x931   :  { %1259 = vmatpush.msrb.mxu3 %v1236_v14 }
 0x933   :  { %1260 = vmatpush.msrb.mxu3 %v1235_v15  ;;  %v1434_v15 = vld [vmem:[#allocation14 + $0x70] sm:$0xff] }
 0x934   :  { %1680 = vmatmul.msk.f32.vlgmr.msrb.gmra.mxu3 %vm219_vm0, %v1166_v39  ;;  %v1238_v39 = vmul.f32 2.0, %v1236_v14 }
 0x93c   :  { %1681 = vmatmul.msk.f32.gmra.mxu3 %vm219_vm0, %v1167_v46  ;;  %v1319_v46 = vld [vmem:[#allocation13 + $0x40] sm:$0xff] }
 0x93d   :  { %1334 = vmatpush.msra.mxu1 %v1319_v46 }
 0x93f   :  { %1335 = vmatpush.msra.mxu1 %v1318_v50 }
 0x941   :  { %1336 = vmatpush.msra.mxu1 %v1317_v49  ;;  %v756_v49 = vsel %vm754_vm4, 1.0, %v2023_v22  ;;  %vm2642_vm4 = vcmp.eq.f32.partialorder %v2302_v20, %v2304_v21  ;;  %v1759_v21 = vld [vmem:[#allocation2 + $0x8] sm:$0xff] }
 0x943   :  { %1337 = vmatpush.msra.mxu1 %v1316_v57  ;;  %v1421_v57 = vld [vmem:[#allocation14 + $0x8] sm:$0xff] }
 0x945   :  { %1338 = vmatpush.msra.mxu1 %v1315_v59 }
 0x947   :  { %1339 = vmatpush.msra.mxu1 %v1314_v61 }
 0x949   :  { %1340 = vmatpush.msra.mxu1 %v1313_v63 }
 0x9b7   :  { %v1262_v27 = vpop.f32.mrf.mxu3 }
 0x9b8   :  { %v1263_v34 = vadd.f32 %v1262_v27, %v1237_v31  ;;  %v1431_v27 = vld [vmem:[#allocation14 + $0x58] sm:$0xff]  ;;  %v1430_v31 = vld [vmem:[#allocation14 + $0x50] sm:$0xff] }
 0x9ba   :  { %v1268_v38 = vmul.f32 %v1263_v34, %v1185_v13 }
 0x9bc   :  { %v1274_v47 = vadd.f32 %v1716_v48, %v1268_v38 }
 0x9be   :  { %v1276_v55 = vmax.f32 %v1274_v47, 0.0 }
 0x9bf   :  { %v1265_v41 = vpop.f32.mrf.mxu3 }
 0x9c0   :  { %v1266_v44 = vadd.f32 %v1265_v41, %v1238_v39  ;;  %v1278_v60 = vmul.f32 %v1276_v55, %v2519_v29  ;;  %v1312_v29 = vld [vmem:[#allocation13 + $0x8] sm:$0xff]  ;;  %v1717_v39 = vld [vmem:[%s2620_s13] ss:$0 sm:$0xff]  ;;  %v1427_v41 = vld [vmem:[#allocation14 + $0x38] sm:$0xff] }
 0x9c1   :  { %1341 = vmatpush.msra.mxu1 %v1312_v29  ;;  %v1422_v55 = vld [vmem:[#allocation14 + $0x10] sm:$0xff] }
 0x9c2   :  { %v1269_v53 = vmul.f32 %v1266_v44, %v1195_v12  ;;  %v1426_v44 = vld [vmem:[#allocation14 + $0x30] sm:$0xff] }
 0x9c3   :  { %1342 = vmatpush.msra.mxu1 %v1311_v0  ;;  %v1543_v29 = vld [vmem:[#allocation16 + $0x70] sm:$0xff]  ;;  %v1542_v0 = vld [vmem:[#allocation16 + $0x68] sm:$0xff] }
 0x9c4   :  { %v1275_v54 = vadd.f32 %v1716_v48, %v1269_v53  ;;  %v1425_v53 = vld [vmem:[#allocation14 + $0x28] sm:$0xff] }
 0x9c6   :  { %v1277_v56 = vmax.f32 %v1275_v54, 0.0  ;;  %v1424_v54 = vld [vmem:[#allocation14 + $0x20] sm:$0xff] }
 0x9c8   :  { %v1279_v58 = vmul.f32 0.0, %v1277_v56  ;;  %v757_v56 = vsel %vm755_vm3, 1.0, %v2023_v22  ;;  %vm2641_vm3 = vcmp.eq.f32.partialorder %v2302_v20, %v2306_v25  ;;  %v1758_v20 = vld [vmem:[#allocation2] sm:$0xff] }
 0x9ca   :  { %1300 = vmatpush.msrb.mxu0 %v1279_v58  ;;  %v1420_v58 = vld [vmem:[#allocation14] sm:$0xff] }
 0x9cc   :  { %1301 = vmatpush.msrb.mxu0 %v1278_v60 }
 0x9cd   :  { %1682 = vmatmul.msk.f32.vlgmr.msrb.gmra.mxu0 %vm219_vm0, %v1071_v62 }
 0x9d5   :  { %1683 = vmatmul.msk.f32.gmra.mxu0 %vm219_vm0, %v1072_v1 }
 0xa4a   :  { %v1303_v19 = vpop.f32.mrf.mxu0 }
 0xa4b   :  { %v1309_v23 = vadd.f32 %v1303_v19, %v2465_v51  ;;  %v1435_v51 = vld [vmem:[#allocation14 + $0x78] sm:$0xff]  ;;  %v1541_v19 = vld [vmem:[#allocation16 + $0x60] sm:$0xff] }
 0xa4c   :  { %1436 = vmatpush.msra.mxu2 %v1435_v51 }
 0xa4d   :  { %1343 = vmatmul.f32.vlgmr.msra.gmra.mxu1 %v1309_v23  ;;  %v1540_v23 = vld [vmem:[#allocation16 + $0x58] sm:$0xff] }
 0xa4e   :  { %1437 = vmatpush.msra.mxu2 %v1434_v15  ;;  %v1718_v15 = vld [vmem:[%s2621_s14] ss:$0 sm:$0xff] }
 0xa52   :  { %v1306_v24 = vpop.f32.mrf.mxu0 }
 0xa53   :  { %v1310_v2 = vadd.f32 %v1306_v24, %v2469_v40  ;;  %v1433_v40 = vld [vmem:[#allocation14 + $0x68] sm:$0xff] }
 0xa54   :  { %1438 = vmatpush.msra.mxu2 %v1433_v40 }
 0xa55   :  { %1346 = vmatmul.f32.gmra.mxu1 %v1310_v2  ;;  %v1539_v2 = vld [vmem:[#allocation16 + $0x50] sm:$0xff] }
 0xa56   :  { %1439 = vmatpush.msra.mxu2 %v1432_v16  ;;  %v1535_v16 = vld [vmem:[#allocation16 + $0x30] sm:$0xff] }
 0xa58   :  { %1440 = vmatpush.msra.mxu2 %v1431_v27 }
 0xa5a   :  { %1441 = vmatpush.msra.mxu2 %v1430_v31  ;;  %v1534_v31 = vld [vmem:[#allocation16 + $0x28] sm:$0xff] }
 0xaca   :  { %v1344_v12 = vpop.f32.mrf.mxu1 }
 0xacb   :  { %v1350_v17 = vmul.f32 %v1344_v12, %v2444_v11 }
 0xacd   :  { %v1352_v52 = vmul.f32 2.0, %v1350_v17 }
 0xad2   :  { %v1347_v13 = vpop.f32.mrf.mxu1 }
 0xad3   :  { %v1351_v14 = vmul.f32 %v1347_v13, %v2442_v5  ;;  %v1538_v13 = vld [vmem:[#allocation16 + $0x48] sm:$0xff] }
 0xad5   :  { %1368 = vmatpush.msra.mxu3 %v1351_v14  ;;  %v1353_v34 = vmul.f32 2.0, %v1351_v14 }
 0xad7   :  { %1369 = vmatpush.msra.mxu3 %v1350_v17  ;;  %v1537_v17 = vld [vmem:[#allocation16 + $0x40] sm:$0xff] }
 0xad8   :  { %1684 = vmatmul.msk.f32.vlgmr.msra.gmra.mxu3 %vm219_vm0, %v2422_v18  ;;  %v1429_v18 = vld [vmem:[#allocation14 + $0x48] sm:$0xff] }
 0xad9   :  { %1442 = vmatpush.msra.mxu2 %v1429_v18  ;;  %v443_v18 = vsel %vm2641_vm3, 1.0, %v2023_v22 }
 0xae0   :  { %1685 = vmatmul.msk.f32.gmra.mxu3 %vm219_vm0, %v2426_v30  ;;  %v1428_v30 = vld [vmem:[#allocation14 + $0x40] sm:$0xff] }
 0xae1   :  { %1443 = vmatpush.msra.mxu2 %v1428_v30  ;;  %v1530_v30 = vld [vmem:[#allocation16 + $0x8] sm:$0xff] }
 0xae3   :  { %1444 = vmatpush.msra.mxu2 %v1427_v41 }
 0xae5   :  { %1445 = vmatpush.msra.mxu2 %v1426_v44 }
 0xae7   :  { %1446 = vmatpush.msra.mxu2 %v1425_v53 }
 0xae9   :  { %1447 = vmatpush.msra.mxu2 %v1424_v54 }
 0xb5b   :  { %v1371_v10 = vpop.f32.mrf.mxu3 }
 0xb5c   :  { %v1372_v32 = vadd.f32 %v1371_v10, %v1352_v52  ;;  %v1536_v10 = vld [vmem:[#allocation16 + $0x38] sm:$0xff] }
 0xb5e   :  { %v1377_v38 = vmul.f32 %v1372_v32, %v2444_v11 }
 0xb60   :  { %v1383_v47 = vadd.f32 %v1717_v39, %v1377_v38  ;;  %v1529_v38 = vld [vmem:[#allocation16] sm:$0xff] }
 0xb62   :  { %v1385_v11 = vmax.f32 %v1383_v47, 0.0 }
 0xb63   :  { %v1374_v35 = vpop.f32.mrf.mxu3 }
 0xb64   :  { %v1375_v26 = vadd.f32 %v1374_v35, %v1353_v34  ;;  %v1533_v34 = vld [vmem:[#allocation16 + $0x20] sm:$0xff]  ;;  %v1532_v35 = vld [vmem:[#allocation16 + $0x18] sm:$0xff] }
 0xb66   :  { %v1378_v48 = vmul.f32 %v1375_v26, %v2442_v5  ;;  %v1423_v5 = vld [vmem:[#allocation14 + $0x18] sm:$0xff]  ;;  %v444_v26 = vsel %vm2642_vm4, 1.0, %v2023_v22 }
 0xb67   :  { %1448 = vmatpush.msra.mxu2 %v1423_v5 }
 0xb68   :  { %v1384_v43 = vadd.f32 %v1717_v39, %v1378_v48 }
 0xb69   :  { %1449 = vmatpush.msra.mxu2 %v1422_v55 }
 0xb6a   :  { %v1386_v46 = vmax.f32 %v1384_v43, 0.0 }
 0xb6b   :  { %1450 = vmatpush.msra.mxu2 %v1421_v57 }
 0xb6c   :  { %v1388_v50 = vmul.f32 0.0, %v1386_v46 }
 0xb6d   :  { %1451 = vmatpush.msra.mxu2 %v1420_v58 }
 0xb6e   :  { %1409 = vmatpush.msra.mxu0 %v1388_v50 }
 0xb70   :  { %1410 = vmatpush.msra.mxu0 %v1385_v11 }
 0xb71   :  { %1686 = vmatmul.msk.f32.vlgmr.msra.gmra.mxu0 %vm219_vm0, %v756_v49 }
 0xb79   :  { %1687 = vmatmul.msk.f32.gmra.mxu0 %vm219_vm0, %v757_v56 }
 0xbee   :  { %v1412_v7 = vpop.f32.mrf.mxu0 }
 0xbef   :  { %v1418_v59 = vadd.f32 %v1412_v7, %v2367_v28  ;;  %v1544_v28 = vld [vmem:[#allocation16 + $0x78] sm:$0xff] }
 0xbf0   :  { %1545 = vmatpush.msrb.mxu1 %v1544_v28 }
 0xbf1   :  { %1452 = vmatmul.f32.vlgmr.msra.gmra.mxu2 %v1418_v59 }
 0xbf2   :  { %1546 = vmatpush.msrb.mxu1 %v1543_v29 }
 0xbf4   :  { %1547 = vmatpush.msrb.mxu1 %v1542_v0 }
 0xbf6   :  { %v1415_v60 = vpop.f32.mrf.mxu0  ;;  %1548 = vmatpush.msrb.mxu1 %v1541_v19 }
 0xbf7   :  { %v1419_v61 = vadd.f32 %v1415_v60, %v2371_v37 }
 0xbf8   :  { %1549 = vmatpush.msrb.mxu1 %v1540_v23 }
 0xbf9   :  { %1455 = vmatmul.f32.gmra.mxu2 %v1419_v61 }
 0xbfa   :  { %1550 = vmatpush.msrb.mxu1 %v1539_v2 }
 0xbfc   :  { %1551 = vmatpush.msrb.mxu1 %v1538_v13 }
 0xbfe   :  { %1552 = vmatpush.msrb.mxu1 %v1537_v17 }
 0xc00   :  { %1553 = vmatpush.msrb.mxu1 %v1536_v10 }
 0xc02   :  { %1554 = vmatpush.msrb.mxu1 %v1535_v16 }
 0xc04   :  { %1555 = vmatpush.msrb.mxu1 %v1534_v31 }
 0xc06   :  { %1556 = vmatpush.msrb.mxu1 %v1533_v34 }
 0xc08   :  { %1557 = vmatpush.msrb.mxu1 %v1532_v35 }
 0xc74   :  { %v1453_v62 = vpop.f32.mrf.mxu2 }
 0xc75   :  { %v1459_v6 = vmul.f32 %v1453_v62, %v2346_v9 }
 0xc77   :  { %v1461_v24 = vmul.f32 2.0, %v1459_v6 }
 0xc7c   :  { %v1456_v63 = vpop.f32.mrf.mxu2 }
 0xc7d   :  { %v1460_v1 = vmul.f32 %v1456_v63, %v2344_v8 }
 0xc7f   :  { %1477 = vmatpush.msrb.mxu3 %v1460_v1  ;;  %v1462_v14 = vmul.f32 2.0, %v1460_v1 }
 0xc81   :  { %1478 = vmatpush.msrb.mxu3 %v1459_v6 }
 0xc82   :  { %1688 = vmatmul.msk.f32.vlgmr.msrb.gmra.mxu3 %vm219_vm0, %v2324_v33 }
 0xc8a   :  { %1689 = vmatmul.msk.f32.gmra.mxu3 %vm219_vm0, %v2328_v36 }
 0xd05   :  { %v1480_v37 = vpop.f32.mrf.mxu3 }
 0xd06   :  { %v1481_v12 = vadd.f32 %v1480_v37, %v1461_v24 }
 0xd08   :  { %v1486_v36 = vmul.f32 %v1481_v12, %v2346_v9 }
 0xd0a   :  { %v1492_v52 = vadd.f32 %v1718_v15, %v1486_v36 }
 0xd0c   :  { %v1494_v9 = vmax.f32 %v1492_v52, 0.0 }
 0xd0d   :  { %v1483_v33 = vpop.f32.mrf.mxu3 }
 0xd0e   :  { %v1484_v51 = vadd.f32 %v1483_v33, %v1462_v14 }
 0xd10   :  { %v1487_v40 = vmul.f32 %v1484_v51, %v2344_v8  ;;  %v1531_v8 = vld [vmem:[#allocation16 + $0x10] sm:$0xff] }
 0xd11   :  { %1558 = vmatpush.msrb.mxu1 %v1531_v8 }
 0xd12   :  { %v1493_v27 = vadd.f32 %v1718_v15, %v1487_v40 }
 0xd13   :  { %1559 = vmatpush.msrb.mxu1 %v1530_v30 }
 0xd14   :  { %v1495_v32 = vmax.f32 %v1493_v27, 0.0 }
 0xd15   :  { %1560 = vmatpush.msrb.mxu1 %v1529_v38 }
 0xd16   :  { %1518 = vmatpush.msrb.mxu0 %v1495_v32 }
 0xd18   :  { %1519 = vmatpush.msrb.mxu0 %v1494_v9 }
 0xd19   :  { %1690 = vmatmul.msk.f32.vlgmr.msrb.gmra.mxu0 %vm219_vm0, %v443_v18 }
 0xd21   :  { %1691 = vmatmul.msk.f32.gmra.mxu0 %vm219_vm0, %v444_v26 }
 0xd96   :  { %v1521_v25 = vpop.f32.mrf.mxu0 }
 0xd97   :  { %v1527_v48 = vadd.f32 %v1521_v25, %v2237_v3 }
 0xd99   :  { %1561 = vmatmul.f32.vlgmr.msrb.gmra.mxu1 %v1527_v48 }
 0xd9e   :  { %v1524_v39 = vpop.f32.mrf.mxu0 }
 0xd9f   :  { %v1528_v41 = vadd.f32 %v1524_v39, %v2239_v4  ;;  %v1719_v4 = vld [vmem:[%s2622_s15] ss:$0 sm:$0xff] }
 0xda1   :  { %1564 = vmatmul.f32.gmra.mxu1 %v1528_v41 }
 0xe16   :  { %v1562_v43 = vpop.f32.mrf.mxu1 }
 0xe17   :  { %v1568_v22 = vmul.f32 %v1562_v43, %v2195_v45 }
 0xe19   :  { %v1570_v3 = vmul.f32 2.0, %v1568_v22 }
 0xe1e   :  { %v1565_v44 = vpop.f32.mrf.mxu1 }
 0xe1f   :  { %v1569_v46 = vmul.f32 %v1565_v44, %v2192_v42 }
 0xe21   :  { %1586 = vmatpush.msra.mxu3 %v1569_v46  ;;  %v1571_v11 = vmul.f32 2.0, %v1569_v46 }
 0xe23   :  { %1587 = vmatpush.msra.mxu3 %v1568_v22 }
 0xe24   :  { %1692 = vmatmul.msk.f32.vlgmr.msra.gmra.mxu3 %vm219_vm0, %v1758_v20 }
 0xe2c   :  { %1693 = vmatmul.msk.f32.gmra.mxu3 %vm219_vm0, %v1759_v21 }
 0xea7   :  { %v1589_v47 = vpop.f32.mrf.mxu3 }
 0xea8   :  { %v1590_v53 = vadd.f32 %v1589_v47, %v1570_v3 }
 0xeaa   :  { %v1595_v50 = vmul.f32 %v1590_v53, %v2195_v45 }
 0xeac   :  { %v1601_v54 = vadd.f32 %v1719_v4, %v1595_v50 }
 0xeae   :  { %1754 = vtanh.f32 %v1601_v54 }
 0xeaf   :  { %v1592_v5 = vpop.f32.mrf.mxu3 }
 0xeb0   :  { %v1593_v49 = vadd.f32 %v1592_v5, %v1571_v11 }
 0xeb2   :  { %v1596_v55 = vmul.f32 %v1593_v49, %v2192_v42 }
 0xeb4   :  { %v1755_v56 = vpop.eup %1754  ;;  %v1602_v57 = vadd.f32 %v1719_v4, %v1596_v55 }
 0xeb5   :  { %1605 = vst [vmem:[#allocation17] sm:$0xff] %v1755_v56 }
 0xeb6   :  { %1756 = vtanh.f32 %v1602_v57 }
 0xebc   :  { %v1757_v45 = vpop.eup %1756 }
 0xebd   :  { %1606 = vst [vmem:[#allocation17 + $0x8] sm:$0xff] %v1757_v45 }
 0xebe   :  { %1619 = dma.vmem_to_hbm [thread:$0]  %s1612_s12, 256, %s1614_s21, [#allocation4], %s2013_s3, %s2013_s3, %s2014_s26  }
 0xebf   :  { %2010 = dma.done.wait [#allocation4], 256  }
 0xec0   :  { %2011 = vsyncadd [#allocation4], 4294967040 }
 0xec1   :  { %1624 = vsyncpa [#allocation3], 1 }
 0xec2   :  { %1625 = vsyncpa [#allocation6], 1 }
 0xec3   :  { %1626 = vsyncpa [#allocation9], 1 }
 0xec4   :  { %1627 = vsyncpa [#allocation12], 1 }
 0xec5   :  { %1628 = vsyncpa [#allocation15], 1 }
 0xec6   :  { %1629 = vsyncpa [#allocation4], 1 }

</bundles_post_ra>
